<compile_context>
chip_gen: v7x
topology: tpu7x:2x2x1
jax: 0.10.0
libtpu: 0.0.40
codegen_flags: <defaults>
</compile_context>

<pallas_src>
import jax
import jax.numpy as jnp
from jax.experimental import pallas as pl
from jax.experimental.pallas import tpu as pltpu

FEATURE_SIZE = 64
HIDDEN_SIZES = [32, 16, 8]            # feature_size == 64 branch of the module
OUTPUT_SIZES = HIDDEN_SIZES + [1]
LN_EPS = 1e-5                         # torch.nn.LayerNorm default

DEFAULT_TILE_B = 2048                 # rows per grid step (512 KiB x-block)
CHUNK_B = 128                         # lanes per inner chunk (1 vreg wide)

# Row offsets inside the packed f32 vector-parameter slab [VEC_ROWS, 1].
_B0, _B1, _B2, _W3, _B3 = 0, 32, 48, 56, 64
VEC_ROWS = 72                         # padded to a multiple of 8 sublanes


# ----------------------------------------------------------------------------
# Kernel
# ----------------------------------------------------------------------------
def dnn_kernel(x_ref, w0_ref, w1_ref, w2_ref, vec_ref, out_ref):
    """x_ref: [TILE_B, 64] row-major; out_ref: [1, TILE_B] lane-dense scores."""
    tile_b = x_ref.shape[0]
    num_chunks = tile_b // CHUNK_B

    # Tiny resident parameters, hoisted out of the chunk loop.
    w0 = w0_ref[...]                          # [32, 64]  matmul dtype
    w1 = w1_ref[...]                          # [16, 32]
    w2 = w2_ref[...]                          # [ 8, 16]
    mm_dtype = w0.dtype
    b0 = vec_ref[_B0:_B0 + 32, :]             # [32, 1] f32 (gamma/beta folded in)
    b1 = vec_ref[_B1:_B1 + 16, :]             # [16, 1]
    b2 = vec_ref[_B2:_B2 + 8, :]              # [ 8, 1]
    w3 = vec_ref[_W3:_W3 + 8, :]              # [ 8, 1] folded final weight
    b3 = vec_ref[_B3:_B3 + 1, :]              # [ 1, 1] folded final bias

    def norm_cols(h):
        # LayerNorm over the feature (sublane) axis of a feature-major
        # [fin, CHUNK_B] tile.  gamma/beta are already folded into W/b, and the
        # centered activations are computed once and reused (fused LN).
        mu = jnp.mean(h, axis=0, keepdims=True)
        xc = h - mu
        var = jnp.mean(xc * xc, axis=0, keepdims=True)
        return xc * jax.lax.rsqrt(var + LN_EPS)

    def elu(h):
        # torch ELU(alpha=1).  TODO(synk): expm1 would be marginally more
        # accurate for tiny negative inputs; exp-1 kept for guaranteed lowering.
        return jnp.where(h > 0, h, jnp.exp(h) - 1.0)

    # Static loop over 128-lane column chunks: the whole 4-layer stack runs per
    # chunk so every intermediate stays in vregs (no VMEM spills of temporaries).
    for c in range(num_chunks):
        col = c * CHUNK_B                                             # static
        xb = x_ref[pl.ds(col, CHUNK_B), :].astype(jnp.float32)        # [CB, 64]

        # ---- layer 0: LayerNorm(64) in row-major, then an NT matmul on the
        #      MXU puts the batch on the 128-lane axis for all later layers.
        mu = jnp.mean(xb, axis=1, keepdims=True)                      # [CB, 1]
        xc = xb - mu
        var = jnp.mean(xc * xc, axis=1, keepdims=True)
        xn = (xc * jax.lax.rsqrt(var + LN_EPS)).astype(mm_dtype)      # [CB, 64]
        h = jax.lax.dot_general(                                      # [32, CB]
            w0, xn, (((1,), (1,)), ((), ())),
            preferred_element_type=jnp.float32) + b0
        h = elu(h)

        # ---- layer 1
        h = jnp.dot(w1, norm_cols(h).astype(mm_dtype),
                    preferred_element_type=jnp.float32) + b1          # [16, CB]
        h = elu(h)

        # ---- layer 2
        h = jnp.dot(w2, norm_cols(h).astype(mm_dtype),
                    preferred_element_type=jnp.float32) + b2          # [ 8, CB]
        h = elu(h)

        # ---- layer 3: LayerNorm(8) + Linear(8, 1) as VPU mult + sublane reduce
        score = jnp.sum(norm_cols(h) * w3, axis=0, keepdims=True) + b3  # [1, CB]
        out_ref[:, pl.ds(col, CHUNK_B)] = score


# ----------------------------------------------------------------------------
# Wrapper
# ----------------------------------------------------------------------------
def _round_up(n, m):
    return ((n + m - 1) // m) * m


def _select_tile(batch, tile_b):
    tile_b = max(CHUNK_B, (tile_b // CHUNK_B) * CHUNK_B)   # multiple of chunk
    tile_b = min(tile_b, _round_up(batch, CHUNK_B))        # don't overshoot
    if batch > CHUNK_B:
        # >= 2 grid steps so the "parallel" axis can shard across v7x's two
        # TensorCores (harmless no-op on single-TC v5e/v6e).
        tile_b = min(tile_b, _round_up(pl.cdiv(batch, 2), CHUNK_B))
    return tile_b


def pack_params(params, matmul_dtype):
    """Fold LN affine into the following Linear and pack the small vectors.

    LN followed by Linear:  W(gamma*x_hat + beta) + b
                         == (W.diag(gamma)) x_hat + (W@beta + b)
    so the kernel only normalizes (subtract mean, scale by rsqrt(var)).
    """
    assert len(params) == 16
    (g0, be0, w0, b0, g1, be1, w1, b1,
     g2, be2, w2, b2, g3, be3, w3, b3) = params

    def fold(g, be, w, b):                   # w: [out, in], g/be: [in, 1]
        return w * g[:, 0][None, :], b + w @ be

    w0f, b0f = fold(g0, be0, w0, b0)
    w1f, b1f = fold(g1, be1, w1, b1)
    w2f, b2f = fold(g2, be2, w2, b2)
    w3f = w3 * g3                             # final weight stored as [8, 1]
    b3f = b3 + w3.T @ be3                     # [1, 1]

    vec = jnp.zeros((VEC_ROWS, 1), jnp.float32)
    vec = vec.at[_B0:_B0 + 32].set(b0f)
    vec = vec.at[_B1:_B1 + 16].set(b1f)
    vec = vec.at[_B2:_B2 + 8].set(b2f)
    vec = vec.at[_W3:_W3 + 8].set(w3f)
    vec = vec.at[_B3:_B3 + 1].set(b3f)
    return (w0f.astype(matmul_dtype), w1f.astype(matmul_dtype),
            w2f.astype(matmul_dtype), vec)


def dnn_forward(x, params, *, tile_b=DEFAULT_TILE_B, matmul_dtype=jnp.bfloat16):
    """x: [batch, 64] (f32; bf16 also accepted and upcast in-register, which
    halves the HBM read on v5e/v6e).  params: flat (gamma, beta, W, b) x 4."""
    batch, feat = x.shape
    if feat != FEATURE_SIZE:
        raise NotImplementedError("only the feature_size == 64 branch is implemented")

    w0, w1, w2, vec = pack_params(params, matmul_dtype)
    tile_b = _select_tile(batch, tile_b)
    num_tiles = pl.cdiv(batch, tile_b)

    rows = num_tiles * tile_b
    flops = 2 * rows * (64 * 32 + 32 * 16 + 16 * 8 + 8 * 1)
    transcendentals = rows * (32 + 16 + 8 + 4)            # ELU exps + rsqrts
    bytes_accessed = (batch * feat * x.dtype.itemsize + batch * 4
                      + sum(int(p.size) * p.dtype.itemsize for p in (w0, w1, w2, vec)))

    in_specs = [
        # x row-major, long contiguous DMAs.  If a profile ever shows exposed
        # DMA at step boundaries, add pipeline_mode=pl.Buffered(3) here.
        pl.BlockSpec((tile_b, feat), lambda i: (i, 0)),
        pl.BlockSpec(w0.shape, lambda i: (0, 0)),          # resident full blocks
        pl.BlockSpec(w1.shape, lambda i: (0, 0)),
        pl.BlockSpec(w2.shape, lambda i: (0, 0)),
        pl.BlockSpec(vec.shape, lambda i: (0, 0)),
    ]

    out = pl.pallas_call(
        dnn_kernel,
        out_shape=jax.ShapeDtypeStruct((1, batch), jnp.float32),
        grid=(num_tiles,),
        in_specs=in_specs,
        out_specs=pl.BlockSpec((1, tile_b), lambda i: (0, i)),
        compiler_params=pltpu.CompilerParams(
            dimension_semantics=("parallel",),
        ),
        cost_estimate=pl.CostEstimate(
            flops=flops,
            transcendentals=transcendentals,
            bytes_accessed=bytes_accessed,
        ),
    )(x, w0, w1, w2, vec)
    return out[0]                              # matches output.squeeze(-1)


# ----------------------------------------------------------------------------
# Parameters & pure-JAX reference (mirrors the PyTorch module)
# ----------------------------------------------------------------------------
def init_params(key, feature_size=FEATURE_SIZE, random_affine=False):
    """Shapes mirroring the module: per layer [gamma[fin,1], beta[fin,1], W, b].

    PyTorch defaults: gamma=1, beta=0; Linear W/b ~ U(-1/sqrt(fin), 1/sqrt(fin)).
    The final layer's weight is stored as a column [8, 1].
    """
    params = []
    fin = feature_size
    n_layers = len(OUTPUT_SIZES)
    for li, out_size in enumerate(OUTPUT_SIZES):
        key, kw, kb, kg, kbe = jax.random.split(key, 5)
        bound = float(1.0 / (fin ** 0.5))
        if random_affine:
            gamma = 1.0 + 0.1 * jax.random.normal(kg, (fin, 1), jnp.float32)
            beta = 0.1 * jax.random.normal(kbe, (fin, 1), jnp.float32)
        else:
            gamma = jnp.ones((fin, 1), jnp.float32)
            beta = jnp.zeros((fin, 1), jnp.float32)
        if li != n_layers - 1:
            w = jax.random.uniform(kw, (out_size, fin), jnp.float32, -bound, bound)
        else:
            w = jax.random.uniform(kw, (fin, out_size), jnp.float32, -bound, bound)
        b = jax.random.uniform(kb, (out_size, 1), jnp.float32, -bound, bound)
        params.extend([gamma, beta, w, b])
        fin = out_size
    return params


def reference_forward(x, params, matmul_dtype=jnp.float32):
    """Straightforward (unfused) JAX mirror of the PyTorch forward pass."""
    h = x
    n_layers = len(OUTPUT_SIZES)
    for i in range(n_layers):
        g, be, w, b = params[4 * i: 4 * i + 4]
        gamma, beta = g[:, 0], be[:, 0]
        mu = jnp.mean(h, axis=-1, keepdims=True)
        var = jnp.mean((h - mu) ** 2, axis=-1, keepdims=True)
        h = (h - mu) * jax.lax.rsqrt(var + LN_EPS) * gamma + beta
        if i != n_layers - 1:
            h = jnp.dot(h.astype(matmul_dtype), w.astype(matmul_dtype).T,
                        preferred_element_type=jnp.float32) + b[:, 0]
            h = jnp.where(h > 0, h, jnp.exp(h) - 1.0)
        else:
            h = h @ w + b[:, 0]                # w is [8, 1]; final layer f32
    return jnp.squeeze(h, axis=-1)


# ----------------------------------------------------------------------------
# Self-test
# ----------------------------------------------------------------------------
if __name__ == "__main__":
    key = jax.random.PRNGKey(0)
    kx, kp, kp2 = jax.random.split(key, 3)

    batch = 300
    x = jax.random.normal(kx, (batch, FEATURE_SIZE), jnp.float32)

    # Test 1: structural + LN-affine-fold correctness with exact f32 matmuls,
    # multiple grid steps including a ragged last tile.
    params_rand = init_params(kp, random_affine=True)
    out_f32 = jax.block_until_ready(
        dnn_forward(x, params_rand, tile_b=256, matmul_dtype=jnp.float32))
    ref_f32 = reference_forward(x, params_rand, matmul_dtype=jnp.float32)
    assert out_f32.shape == (batch,), out_f32.shape
    assert jnp.allclose(out_f32, ref_f32, atol=1e-4, rtol=1e-4)

    # Test 2: default fast path (bf16 MXU operands, default tiling) against a
    # bf16-matching reference; PyTorch-default gamma=1 / beta=0 params.
    params_def = init_params(kp2)
    out_bf = jax.block_until_ready(dnn_forward(x, params_def))
    ref_bf = reference_forward(x, params_def, matmul_dtype=jnp.bfloat16)
    assert out_bf.shape == (batch,)
    assert jnp.allclose(out_bf, ref_bf, atol=5e-3, rtol=5e-3)

    # Test 3: tiny batch -> a single (heavily ragged) tile.
    out_small = jax.block_until_ready(dnn_forward(x[:8], params_def))
    assert out_small.shape == (8,)
    assert jnp.allclose(out_small, ref_bf[:8], atol=5e-3, rtol=5e-3)

    print("KERNEL_OK")
</pallas_src>

<mosaic_0001>
module attributes {stable_mosaic.version = 11 : i64} {
  func.func @dnn_kernel(%arg0: i32, %arg1: memref<256x64xf32, #tpu.memory_space<vmem>>, %arg2: memref<32x64xf32, #tpu.memory_space<vmem>>, %arg3: memref<16x32xf32, #tpu.memory_space<vmem>>, %arg4: memref<8x16xf32, #tpu.memory_space<vmem>>, %arg5: memref<72x1xf32, #tpu.memory_space<vmem>>, %arg6: memref<1x256xf32, #tpu.memory_space<vmem>>) attributes {dimension_semantics = [#tpu.dimension_semantics<parallel>], iteration_bounds = array<i64: 2>, scalar_prefetch = 0 : i64, scratch_operands = 0 : i64, tpu.core_type = #tpu.core_type<tc>, window_params = [{transform_indices = @transform_0, window_bounds = array<i64: 256, 64>}, {pipeline_mode = #tpu.pipeline_mode<synchronous>, transform_indices = @transform_1, window_bounds = array<i64: 32, 64>}, {pipeline_mode = #tpu.pipeline_mode<synchronous>, transform_indices = @transform_2, window_bounds = array<i64: 16, 32>}, {pipeline_mode = #tpu.pipeline_mode<synchronous>, transform_indices = @transform_3, window_bounds = array<i64: 8, 16>}, {pipeline_mode = #tpu.pipeline_mode<synchronous>, transform_indices = @transform_4, window_bounds = array<i64: 72, 1>}, {transform_indices = @transform_5, window_bounds = array<i64: 1, 256>}]} {
    %c0 = arith.constant 0 : index
    %c0_0 = arith.constant 0 : index
    %0 = vector.load %arg2[%c0, %c0_0] : memref<32x64xf32, #tpu.memory_space<vmem>>, vector<32x64xf32>
    %c0_1 = arith.constant 0 : index
    %c0_2 = arith.constant 0 : index
    %1 = vector.load %arg3[%c0_1, %c0_2] : memref<16x32xf32, #tpu.memory_space<vmem>>, vector<16x32xf32>
    %c0_3 = arith.constant 0 : index
    %c0_4 = arith.constant 0 : index
    %2 = vector.load %arg4[%c0_3, %c0_4] : memref<8x16xf32, #tpu.memory_space<vmem>>, vector<8x16xf32>
    %c0_5 = arith.constant 0 : index
    %c0_6 = arith.constant 0 : index
    %3 = vector.load %arg5[%c0_5, %c0_6] : memref<72x1xf32, #tpu.memory_space<vmem>>, vector<32x1xf32>
    %c32 = arith.constant 32 : index
    %c0_7 = arith.constant 0 : index
    %4 = vector.load %arg5[%c32, %c0_7] : memref<72x1xf32, #tpu.memory_space<vmem>>, vector<16x1xf32>
    %c48 = arith.constant 48 : index
    %c0_8 = arith.constant 0 : index
    %5 = vector.load %arg5[%c48, %c0_8] : memref<72x1xf32, #tpu.memory_space<vmem>>, vector<8x1xf32>
    %c56 = arith.constant 56 : index
    %c0_9 = arith.constant 0 : index
    %6 = vector.load %arg5[%c56, %c0_9] : memref<72x1xf32, #tpu.memory_space<vmem>>, vector<8x1xf32>
    %c64 = arith.constant 64 : index
    %c0_10 = arith.constant 0 : index
    %7 = vector.load %arg5[%c64, %c0_10] : memref<72x1xf32, #tpu.memory_space<vmem>>, vector<1x1xf32>
    %c0_11 = arith.constant 0 : index
    %c0_12 = arith.constant 0 : index
    %8 = vector.load %arg1[%c0_11, %c0_12] : memref<256x64xf32, #tpu.memory_space<vmem>>, vector<128x64xf32>
    %cst = arith.constant dense<0.000000e+00> : vector<128xf32>
    %9 = vector.multi_reduction <add>, %8, %cst [1] : vector<128x64xf32> to vector<128xf32>
    %10 = vector.shape_cast %9 : vector<128xf32> to vector<128x1xf32>
    %cst_13 = arith.constant 6.400000e+01 : f32
    %11 = vector.broadcast %cst_13 : f32 to vector<128x1xf32>
    %12 = arith.divf %10, %11 : vector<128x1xf32>
    %13 = vector.broadcast %12 : vector<128x1xf32> to vector<128x64xf32>
    %14 = arith.subf %8, %13 : vector<128x64xf32>
    %15 = arith.mulf %14, %14 : vector<128x64xf32>
    %cst_14 = arith.constant dense<0.000000e+00> : vector<128xf32>
    %16 = vector.multi_reduction <add>, %15, %cst_14 [1] : vector<128x64xf32> to vector<128xf32>
    %17 = vector.shape_cast %16 : vector<128xf32> to vector<128x1xf32>
    %cst_15 = arith.constant 6.400000e+01 : f32
    %18 = vector.broadcast %cst_15 : f32 to vector<128x1xf32>
    %19 = arith.divf %17, %18 : vector<128x1xf32>
    %cst_16 = arith.constant 9.99999974E-6 : f32
    %20 = vector.broadcast %cst_16 : f32 to vector<128x1xf32>
    %21 = arith.addf %19, %20 : vector<128x1xf32>
    %22 = math.rsqrt %21 : vector<128x1xf32>
    %23 = vector.broadcast %22 : vector<128x1xf32> to vector<128x64xf32>
    %24 = arith.mulf %14, %23 : vector<128x64xf32>
    %cst_17 = arith.constant dense<0.000000e+00> : vector<32x128xf32>
    %25 = tpu.matmul %0, %24, %cst_17 {dimension_numbers = #tpu.dot_dimension_numbers<[1], [1], [0], [0], [0, 0, 1, 0], [], []>} : vector<32x64xf32>, vector<128x64xf32>, vector<32x128xf32> -> vector<32x128xf32>
    %26 = vector.broadcast %3 : vector<32x1xf32> to vector<32x128xf32>
    %27 = arith.addf %25, %26 : vector<32x128xf32>
    %cst_18 = arith.constant 0.000000e+00 : f32
    %28 = vector.broadcast %cst_18 : f32 to vector<32x128xf32>
    %29 = arith.cmpf ogt, %27, %28 : vector<32x128xf32>
    %30 = math.exp %27 : vector<32x128xf32>
    %cst_19 = arith.constant 1.000000e+00 : f32
    %31 = vector.broadcast %cst_19 : f32 to vector<32x128xf32>
    %32 = arith.subf %30, %31 : vector<32x128xf32>
    %33 = arith.select %29, %27, %32 : vector<32x128xi1>, vector<32x128xf32>
    %cst_20 = arith.constant dense<0.000000e+00> : vector<128xf32>
    %34 = vector.multi_reduction <add>, %33, %cst_20 [0] : vector<32x128xf32> to vector<128xf32>
    %35 = vector.shape_cast %34 : vector<128xf32> to vector<1x128xf32>
    %cst_21 = arith.constant 3.200000e+01 : f32
    %36 = vector.broadcast %cst_21 : f32 to vector<1x128xf32>
    %37 = arith.divf %35, %36 : vector<1x128xf32>
    %38 = vector.broadcast %37 : vector<1x128xf32> to vector<32x128xf32>
    %39 = arith.subf %33, %38 : vector<32x128xf32>
    %40 = arith.mulf %39, %39 : vector<32x128xf32>
    %cst_22 = arith.constant dense<0.000000e+00> : vector<128xf32>
    %41 = vector.multi_reduction <add>, %40, %cst_22 [0] : vector<32x128xf32> to vector<128xf32>
    %42 = vector.shape_cast %41 : vector<128xf32> to vector<1x128xf32>
    %cst_23 = arith.constant 3.200000e+01 : f32
    %43 = vector.broadcast %cst_23 : f32 to vector<1x128xf32>
    %44 = arith.divf %42, %43 : vector<1x128xf32>
    %cst_24 = arith.constant 9.99999974E-6 : f32
    %45 = vector.broadcast %cst_24 : f32 to vector<1x128xf32>
    %46 = arith.addf %44, %45 : vector<1x128xf32>
    %47 = math.rsqrt %46 : vector<1x128xf32>
    %48 = vector.broadcast %47 : vector<1x128xf32> to vector<32x128xf32>
    %49 = arith.mulf %39, %48 : vector<32x128xf32>
    %cst_25 = arith.constant dense<0.000000e+00> : vector<16x128xf32>
    %50 = tpu.matmul %1, %49, %cst_25 {dimension_numbers = #tpu.dot_dimension_numbers<[1], [0], [0], [1], [0, 0, 1, 1], [], []>} : vector<16x32xf32>, vector<32x128xf32>, vector<16x128xf32> -> vector<16x128xf32>
    %51 = vector.broadcast %4 : vector<16x1xf32> to vector<16x128xf32>
    %52 = arith.addf %50, %51 : vector<16x128xf32>
    %cst_26 = arith.constant 0.000000e+00 : f32
    %53 = vector.broadcast %cst_26 : f32 to vector<16x128xf32>
    %54 = arith.cmpf ogt, %52, %53 : vector<16x128xf32>
    %55 = math.exp %52 : vector<16x128xf32>
    %cst_27 = arith.constant 1.000000e+00 : f32
    %56 = vector.broadcast %cst_27 : f32 to vector<16x128xf32>
    %57 = arith.subf %55, %56 : vector<16x128xf32>
    %58 = arith.select %54, %52, %57 : vector<16x128xi1>, vector<16x128xf32>
    %cst_28 = arith.constant dense<0.000000e+00> : vector<128xf32>
    %59 = vector.multi_reduction <add>, %58, %cst_28 [0] : vector<16x128xf32> to vector<128xf32>
    %60 = vector.shape_cast %59 : vector<128xf32> to vector<1x128xf32>
    %cst_29 = arith.constant 1.600000e+01 : f32
    %61 = vector.broadcast %cst_29 : f32 to vector<1x128xf32>
    %62 = arith.divf %60, %61 : vector<1x128xf32>
    %63 = vector.broadcast %62 : vector<1x128xf32> to vector<16x128xf32>
    %64 = arith.subf %58, %63 : vector<16x128xf32>
    %65 = arith.mulf %64, %64 : vector<16x128xf32>
    %cst_30 = arith.constant dense<0.000000e+00> : vector<128xf32>
    %66 = vector.multi_reduction <add>, %65, %cst_30 [0] : vector<16x128xf32> to vector<128xf32>
    %67 = vector.shape_cast %66 : vector<128xf32> to vector<1x128xf32>
    %cst_31 = arith.constant 1.600000e+01 : f32
    %68 = vector.broadcast %cst_31 : f32 to vector<1x128xf32>
    %69 = arith.divf %67, %68 : vector<1x128xf32>
    %cst_32 = arith.constant 9.99999974E-6 : f32
    %70 = vector.broadcast %cst_32 : f32 to vector<1x128xf32>
    %71 = arith.addf %69, %70 : vector<1x128xf32>
    %72 = math.rsqrt %71 : vector<1x128xf32>
    %73 = vector.broadcast %72 : vector<1x128xf32> to vector<16x128xf32>
    %74 = arith.mulf %64, %73 : vector<16x128xf32>
    %cst_33 = arith.constant dense<0.000000e+00> : vector<8x128xf32>
    %75 = tpu.matmul %2, %74, %cst_33 {dimension_numbers = #tpu.dot_dimension_numbers<[1], [0], [0], [1], [0, 0, 1, 1], [], []>} : vector<8x16xf32>, vector<16x128xf32>, vector<8x128xf32> -> vector<8x128xf32>
    %76 = vector.broadcast %5 : vector<8x1xf32> to vector<8x128xf32>
    %77 = arith.addf %75, %76 : vector<8x128xf32>
    %cst_34 = arith.constant 0.000000e+00 : f32
    %78 = vector.broadcast %cst_34 : f32 to vector<8x128xf32>
    %79 = arith.cmpf ogt, %77, %78 : vector<8x128xf32>
    %80 = math.exp %77 : vector<8x128xf32>
    %cst_35 = arith.constant 1.000000e+00 : f32
    %81 = vector.broadcast %cst_35 : f32 to vector<8x128xf32>
    %82 = arith.subf %80, %81 : vector<8x128xf32>
    %83 = arith.select %79, %77, %82 : vector<8x128xi1>, vector<8x128xf32>
    %cst_36 = arith.constant dense<0.000000e+00> : vector<128xf32>
    %84 = vector.multi_reduction <add>, %83, %cst_36 [0] : vector<8x128xf32> to vector<128xf32>
    %85 = vector.shape_cast %84 : vector<128xf32> to vector<1x128xf32>
    %cst_37 = arith.constant 8.000000e+00 : f32
    %86 = vector.broadcast %cst_37 : f32 to vector<1x128xf32>
    %87 = arith.divf %85, %86 : vector<1x128xf32>
    %88 = vector.broadcast %87 : vector<1x128xf32> to vector<8x128xf32>
    %89 = arith.subf %83, %88 : vector<8x128xf32>
    %90 = arith.mulf %89, %89 : vector<8x128xf32>
    %cst_38 = arith.constant dense<0.000000e+00> : vector<128xf32>
    %91 = vector.multi_reduction <add>, %90, %cst_38 [0] : vector<8x128xf32> to vector<128xf32>
    %92 = vector.shape_cast %91 : vector<128xf32> to vector<1x128xf32>
    %cst_39 = arith.constant 8.000000e+00 : f32
    %93 = vector.broadcast %cst_39 : f32 to vector<1x128xf32>
    %94 = arith.divf %92, %93 : vector<1x128xf32>
    %cst_40 = arith.constant 9.99999974E-6 : f32
    %95 = vector.broadcast %cst_40 : f32 to vector<1x128xf32>
    %96 = arith.addf %94, %95 : vector<1x128xf32>
    %97 = math.rsqrt %96 : vector<1x128xf32>
    %98 = vector.broadcast %97 : vector<1x128xf32> to vector<8x128xf32>
    %99 = arith.mulf %89, %98 : vector<8x128xf32>
    %100 = vector.broadcast %6 : vector<8x1xf32> to vector<8x128xf32>
    %101 = arith.mulf %99, %100 : vector<8x128xf32>
    %cst_41 = arith.constant dense<0.000000e+00> : vector<128xf32>
    %102 = vector.multi_reduction <add>, %101, %cst_41 [0] : vector<8x128xf32> to vector<128xf32>
    %103 = vector.shape_cast %102 : vector<128xf32> to vector<1x128xf32>
    %104 = vector.broadcast %7 : vector<1x1xf32> to vector<1x128xf32>
    %105 = arith.addf %103, %104 : vector<1x128xf32>
    %c0_42 = arith.constant 0 : index
    %c0_43 = arith.constant 0 : index
    %106 = vector.load %arg6[%c0_42, %c0_43] : memref<1x256xf32, #tpu.memory_space<vmem>>, vector<1x128xf32>
    tpu.vector_store %arg6[%c0_42, %c0_43], %105 {strides = array<i32>} : memref<1x256xf32, #tpu.memory_space<vmem>>, vector<1x128xf32>,
    %c128 = arith.constant 128 : index
    %c0_44 = arith.constant 0 : index
    %107 = vector.load %arg1[%c128, %c0_44] : memref<256x64xf32, #tpu.memory_space<vmem>>, vector<128x64xf32>
    %cst_45 = arith.constant dense<0.000000e+00> : vector<128xf32>
    %108 = vector.multi_reduction <add>, %107, %cst_45 [1] : vector<128x64xf32> to vector<128xf32>
    %109 = vector.shape_cast %108 : vector<128xf32> to vector<128x1xf32>
    %cst_46 = arith.constant 6.400000e+01 : f32
    %110 = vector.broadcast %cst_46 : f32 to vector<128x1xf32>
    %111 = arith.divf %109, %110 : vector<128x1xf32>
    %112 = vector.broadcast %111 : vector<128x1xf32> to vector<128x64xf32>
    %113 = arith.subf %107, %112 : vector<128x64xf32>
    %114 = arith.mulf %113, %113 : vector<128x64xf32>
    %cst_47 = arith.constant dense<0.000000e+00> : vector<128xf32>
    %115 = vector.multi_reduction <add>, %114, %cst_47 [1] : vector<128x64xf32> to vector<128xf32>
    %116 = vector.shape_cast %115 : vector<128xf32> to vector<128x1xf32>
    %cst_48 = arith.constant 6.400000e+01 : f32
    %117 = vector.broadcast %cst_48 : f32 to vector<128x1xf32>
    %118 = arith.divf %116, %117 : vector<128x1xf32>
    %cst_49 = arith.constant 9.99999974E-6 : f32
    %119 = vector.broadcast %cst_49 : f32 to vector<128x1xf32>
    %120 = arith.addf %118, %119 : vector<128x1xf32>
    %121 = math.rsqrt %120 : vector<128x1xf32>
    %122 = vector.broadcast %121 : vector<128x1xf32> to vector<128x64xf32>
    %123 = arith.mulf %113, %122 : vector<128x64xf32>
    %cst_50 = arith.constant dense<0.000000e+00> : vector<32x128xf32>
    %124 = tpu.matmul %0, %123, %cst_50 {dimension_numbers = #tpu.dot_dimension_numbers<[1], [1], [0], [0], [0, 0, 1, 0], [], []>} : vector<32x64xf32>, vector<128x64xf32>, vector<32x128xf32> -> vector<32x128xf32>
    %125 = vector.broadcast %3 : vector<32x1xf32> to vector<32x128xf32>
    %126 = arith.addf %124, %125 : vector<32x128xf32>
    %cst_51 = arith.constant 0.000000e+00 : f32
    %127 = vector.broadcast %cst_51 : f32 to vector<32x128xf32>
    %128 = arith.cmpf ogt, %126, %127 : vector<32x128xf32>
    %129 = math.exp %126 : vector<32x128xf32>
    %cst_52 = arith.constant 1.000000e+00 : f32
    %130 = vector.broadcast %cst_52 : f32 to vector<32x128xf32>
    %131 = arith.subf %129, %130 : vector<32x128xf32>
    %132 = arith.select %128, %126, %131 : vector<32x128xi1>, vector<32x128xf32>
    %cst_53 = arith.constant dense<0.000000e+00> : vector<128xf32>
    %133 = vector.multi_reduction <add>, %132, %cst_53 [0] : vector<32x128xf32> to vector<128xf32>
    %134 = vector.shape_cast %133 : vector<128xf32> to vector<1x128xf32>
    %cst_54 = arith.constant 3.200000e+01 : f32
    %135 = vector.broadcast %cst_54 : f32 to vector<1x128xf32>
    %136 = arith.divf %134, %135 : vector<1x128xf32>
    %137 = vector.broadcast %136 : vector<1x128xf32> to vector<32x128xf32>
    %138 = arith.subf %132, %137 : vector<32x128xf32>
    %139 = arith.mulf %138, %138 : vector<32x128xf32>
    %cst_55 = arith.constant dense<0.000000e+00> : vector<128xf32>
    %140 = vector.multi_reduction <add>, %139, %cst_55 [0] : vector<32x128xf32> to vector<128xf32>
    %141 = vector.shape_cast %140 : vector<128xf32> to vector<1x128xf32>
    %cst_56 = arith.constant 3.200000e+01 : f32
    %142 = vector.broadcast %cst_56 : f32 to vector<1x128xf32>
    %143 = arith.divf %141, %142 : vector<1x128xf32>
    %cst_57 = arith.constant 9.99999974E-6 : f32
    %144 = vector.broadcast %cst_57 : f32 to vector<1x128xf32>
    %145 = arith.addf %143, %144 : vector<1x128xf32>
    %146 = math.rsqrt %145 : vector<1x128xf32>
    %147 = vector.broadcast %146 : vector<1x128xf32> to vector<32x128xf32>
    %148 = arith.mulf %138, %147 : vector<32x128xf32>
    %cst_58 = arith.constant dense<0.000000e+00> : vector<16x128xf32>
    %149 = tpu.matmul %1, %148, %cst_58 {dimension_numbers = #tpu.dot_dimension_numbers<[1], [0], [0], [1], [0, 0, 1, 1], [], []>} : vector<16x32xf32>, vector<32x128xf32>, vector<16x128xf32> -> vector<16x128xf32>
    %150 = vector.broadcast %4 : vector<16x1xf32> to vector<16x128xf32>
    %151 = arith.addf %149, %150 : vector<16x128xf32>
    %cst_59 = arith.constant 0.000000e+00 : f32
    %152 = vector.broadcast %cst_59 : f32 to vector<16x128xf32>
    %153 = arith.cmpf ogt, %151, %152 : vector<16x128xf32>
    %154 = math.exp %151 : vector<16x128xf32>
    %cst_60 = arith.constant 1.000000e+00 : f32
    %155 = vector.broadcast %cst_60 : f32 to vector<16x128xf32>
    %156 = arith.subf %154, %155 : vector<16x128xf32>
    %157 = arith.select %153, %151, %156 : vector<16x128xi1>, vector<16x128xf32>
    %cst_61 = arith.constant dense<0.000000e+00> : vector<128xf32>
    %158 = vector.multi_reduction <add>, %157, %cst_61 [0] : vector<16x128xf32> to vector<128xf32>
    %159 = vector.shape_cast %158 : vector<128xf32> to vector<1x128xf32>
    %cst_62 = arith.constant 1.600000e+01 : f32
    %160 = vector.broadcast %cst_62 : f32 to vector<1x128xf32>
    %161 = arith.divf %159, %160 : vector<1x128xf32>
    %162 = vector.broadcast %161 : vector<1x128xf32> to vector<16x128xf32>
    %163 = arith.subf %157, %162 : vector<16x128xf32>
    %164 = arith.mulf %163, %163 : vector<16x128xf32>
    %cst_63 = arith.constant dense<0.000000e+00> : vector<128xf32>
    %165 = vector.multi_reduction <add>, %164, %cst_63 [0] : vector<16x128xf32> to vector<128xf32>
    %166 = vector.shape_cast %165 : vector<128xf32> to vector<1x128xf32>
    %cst_64 = arith.constant 1.600000e+01 : f32
    %167 = vector.broadcast %cst_64 : f32 to vector<1x128xf32>
    %168 = arith.divf %166, %167 : vector<1x128xf32>
    %cst_65 = arith.constant 9.99999974E-6 : f32
    %169 = vector.broadcast %cst_65 : f32 to vector<1x128xf32>
    %170 = arith.addf %168, %169 : vector<1x128xf32>
    %171 = math.rsqrt %170 : vector<1x128xf32>
    %172 = vector.broadcast %171 : vector<1x128xf32> to vector<16x128xf32>
    %173 = arith.mulf %163, %172 : vector<16x128xf32>
    %cst_66 = arith.constant dense<0.000000e+00> : vector<8x128xf32>
    %174 = tpu.matmul %2, %173, %cst_66 {dimension_numbers = #tpu.dot_dimension_numbers<[1], [0], [0], [1], [0, 0, 1, 1], [], []>} : vector<8x16xf32>, vector<16x128xf32>, vector<8x128xf32> -> vector<8x128xf32>
    %175 = vector.broadcast %5 : vector<8x1xf32> to vector<8x128xf32>
    %176 = arith.addf %174, %175 : vector<8x128xf32>
    %cst_67 = arith.constant 0.000000e+00 : f32
    %177 = vector.broadcast %cst_67 : f32 to vector<8x128xf32>
    %178 = arith.cmpf ogt, %176, %177 : vector<8x128xf32>
    %179 = math.exp %176 : vector<8x128xf32>
    %cst_68 = arith.constant 1.000000e+00 : f32
    %180 = vector.broadcast %cst_68 : f32 to vector<8x128xf32>
    %181 = arith.subf %179, %180 : vector<8x128xf32>
    %182 = arith.select %178, %176, %181 : vector<8x128xi1>, vector<8x128xf32>
    %cst_69 = arith.constant dense<0.000000e+00> : vector<128xf32>
    %183 = vector.multi_reduction <add>, %182, %cst_69 [0] : vector<8x128xf32> to vector<128xf32>
    %184 = vector.shape_cast %183 : vector<128xf32> to vector<1x128xf32>
    %cst_70 = arith.constant 8.000000e+00 : f32
    %185 = vector.broadcast %cst_70 : f32 to vector<1x128xf32>
    %186 = arith.divf %184, %185 : vector<1x128xf32>
    %187 = vector.broadcast %186 : vector<1x128xf32> to vector<8x128xf32>
    %188 = arith.subf %182, %187 : vector<8x128xf32>
    %189 = arith.mulf %188, %188 : vector<8x128xf32>
    %cst_71 = arith.constant dense<0.000000e+00> : vector<128xf32>
    %190 = vector.multi_reduction <add>, %189, %cst_71 [0] : vector<8x128xf32> to vector<128xf32>
    %191 = vector.shape_cast %190 : vector<128xf32> to vector<1x128xf32>
    %cst_72 = arith.constant 8.000000e+00 : f32
    %192 = vector.broadcast %cst_72 : f32 to vector<1x128xf32>
    %193 = arith.divf %191, %192 : vector<1x128xf32>
    %cst_73 = arith.constant 9.99999974E-6 : f32
    %194 = vector.broadcast %cst_73 : f32 to vector<1x128xf32>
    %195 = arith.addf %193, %194 : vector<1x128xf32>
    %196 = math.rsqrt %195 : vector<1x128xf32>
    %197 = vector.broadcast %196 : vector<1x128xf32> to vector<8x128xf32>
    %198 = arith.mulf %188, %197 : vector<8x128xf32>
    %199 = vector.broadcast %6 : vector<8x1xf32> to vector<8x128xf32>
    %200 = arith.mulf %198, %199 : vector<8x128xf32>
    %cst_74 = arith.constant dense<0.000000e+00> : vector<128xf32>
    %201 = vector.multi_reduction <add>, %200, %cst_74 [0] : vector<8x128xf32> to vector<128xf32>
    %202 = vector.shape_cast %201 : vector<128xf32> to vector<1x128xf32>
    %203 = vector.broadcast %7 : vector<1x1xf32> to vector<1x128xf32>
    %204 = arith.addf %202, %203 : vector<1x128xf32>
    %c0_75 = arith.constant 0 : index
    %c128_76 = arith.constant 128 : index
    %205 = vector.load %arg6[%c0_75, %c128_76] : memref<1x256xf32, #tpu.memory_space<vmem>>, vector<1x128xf32>
    tpu.vector_store %arg6[%c0_75, %c128_76], %204 {strides = array<i32>} : memref<1x256xf32, #tpu.memory_space<vmem>>, vector<1x128xf32>,
    return
  }
  func.func @transform_0(%arg0: i32) -> (i32, i32) {
    %c0_i32 = arith.constant 0 : i32
    %c0_i32_0 = arith.constant 0 : i32
    return %arg0, %c0_i32 : i32, i32
  }
  func.func @transform_1(%arg0: i32) -> (i32, i32) {
    %c0_i32 = arith.constant 0 : i32
    %c0_i32_0 = arith.constant 0 : i32
    %c0_i32_1 = arith.constant 0 : i32
    return %c0_i32, %c0_i32_0 : i32, i32
  }
  func.func @transform_2(%arg0: i32) -> (i32, i32) {
    %c0_i32 = arith.constant 0 : i32
    %c0_i32_0 = arith.constant 0 : i32
    %c0_i32_1 = arith.constant 0 : i32
    return %c0_i32, %c0_i32_0 : i32, i32
  }
  func.func @transform_3(%arg0: i32) -> (i32, i32) {
    %c0_i32 = arith.constant 0 : i32
    %c0_i32_0 = arith.constant 0 : i32
    %c0_i32_1 = arith.constant 0 : i32
    return %c0_i32, %c0_i32_0 : i32, i32
  }
  func.func @transform_4(%arg0: i32) -> (i32, i32) {
    %c0_i32 = arith.constant 0 : i32
    %c0_i32_0 = arith.constant 0 : i32
    %c0_i32_1 = arith.constant 0 : i32
    return %c0_i32, %c0_i32_0 : i32, i32
  }
  func.func @transform_5(%arg0: i32) -> (i32, i32) {
    %c0_i32 = arith.constant 0 : i32
    %c0_i32_0 = arith.constant 0 : i32
    return %c0_i32, %arg0 : i32, i32
  }
}

</mosaic_0001>

<bundles_post_ra>
// kernel: tpu_custom_call.1
= control target key start
LH: loop header
LB: loop body
LE: loop exit
PB: predicated region body
PF: predicated region fallthrough
CT: control target
= control target key end

     0   :  { %10 = vsyncpa [#allocation3], 0  ;;  %s2974_s0 = inlined_call_operand.vmem [shape: f32[300,64], index: 0, kind: input, shape index: {}]   ;;  %s2975_s1 = inlined_call_operand.vmem [shape: f32[32,64], index: 1, kind: input, shape index: {}]   ;;  %s2976_s2 = inlined_call_operand.vmem [shape: f32[16,32], index: 2, kind: input, shape index: {}]   ;;  %s2977_s3 = inlined_call_operand.vmem [shape: f32[8,16], index: 3, kind: input, shape index: {}]   ;;  %s2978_s4 = inlined_call_operand.vmem [shape: f32[72,1], index: 4, kind: input, shape index: {}]   ;;  %s2979_s5 = inlined_call_operand.hbm [shape: f32[1,300], index: 5, kind: output, shape index: {}]  }
   0x1   :  { %12 = vsyncpa [#allocation3 + $0x1], 0  ;;  %s2278_s18 = smov 0   ;;  %s2280_s19 = smov 0  }
   0x2   :  { %s2282_s20 = smov 0   ;;  %s2284_s21 = smov 0  }
   0x3 LB: > { %s2299_s22 = sadd.s32 4294967295, %s2241_s21   ;;  %s1668_s23 = sadd.s32 4294967294, %s2241_s21   ;;  %s2241_s21 = sphi %s2284_s21, %s2989_s21   ;;  %s2237_s20 = sphi %s2282_s20, %s2988_s20   ;;  %s2233_s19 = sphi %s2280_s19, %s2987_s19   ;;  %s2229_s18 = sphi %s2278_s18, %s2986_s18  }
   0x4   : > { %s2303_s24 = sadd.s32 1, %s2241_s21   ;;  %s135_s25 = sadd.s32 1, %s2237_s20 }
   0x5   : > { %s132_s26 = ssub.s32 %s2241_s21, %s2303_s24  ;;  %p145_p0 = scmp.ne.s32.totalorder %s2237_s20, %s2233_s19 }
   0x6   : > { %p133_p1 = scmp.eq.s32.totalorder %s132_s26, 0  ;;  %p146_p2 = scmp.eq.s32.totalorder %s2299_s22, 1 }
   0x7   : > { %p151_p3 = scmp.ne.s32.totalorder %s2233_s19, %s2229_s18  ;;  %p152_p4 = scmp.eq.s32.totalorder %s1668_s23, 1 }
   0x8   : > { %s2314_s27 = scalar_select %p133_p1, %s2237_s20, %s135_s25  }
   0x9   : > { %p2316_p5 = por %p146_p2, %p145_p0  ;;  %p2320_p6 = por %p152_p4, %p151_p3 }
   0xa   : > { %p1671_p7 = scmp.ge.s32.totalorder %s2241_s21, 1  ;;  %p199_p8 = scmp.lt.s32.totalorder %s2241_s21, 3 }
   0xc   : > { %p200_p9 = pnand %p1671_p7, %p199_p8 }
   0xd   : > { %s2327_s30 = sshll.u32 (!%p200_p9), %s2299_s22, 5  ;;  %vm282_vm0 = vcmask (!%p200_p9), 523264   ;;  %v2243_v32 = vmov (!%p200_p9), 0   ;;  %vm722_vm2 = vcmask (!%p200_p9), 261120   ;;  %vm2245_vm7 = vmmov (!%p200_p9), 0   ;;  %s228_s13 = sand.u32 (!%p200_p9), 1, %s2233_s19  }
   0xe   : > { %203 = sbr.rel (%p200_p9) target bundleno = 1973 (0x7b5), region = 40  ;;  %p236_p10 = scmp.lt.s32.totalorder (!%p200_p9), %s2327_s30, 37  ;;  %2074 = vset.pattern.permute.xlu1 (!%p200_p9), %v2243_v32  ;;  %2073 = vset.pattern.permute.xlu0 (!%p200_p9), %v2243_v32  ;;  %vm2588_vm1 = vmpackc.low (!%p200_p9), %vm282_vm0, %vm282_vm0  ;;  %vm844_vm10 = vcmask (!%p200_p9), 130048  }
   0xf   : > { %s1672_s14 = sshll.u32 (!%p200_p9), %s228_s13, 1  ;;  %s2919_s16 = scalar_lea.sflag (!%p200_p9), [#allocation3], %s228_s13 }
  0x10   : > { %s2897_s15 = scalar_lea.vmem (!%p200_p9), [#allocation2], %s1672_s14 }
  0x15   : > { %s237_s6 = scalar_select %p236_p10, %s2327_s30, 37 }
  0x16   : > { %s1736_s17 = sshll.u32 (%p2316_p5), %s2299_s22, 1 }
  0x17   : > { %s1674_s7 = sshll.u32 %s237_s6, 3  ;;  %s1598_s23 = ssub.s32 (%p2316_p5), 3, %s1736_s17 }
  0x18   : > { %s2334_s10 = scalar_lea.vmem %s2974_s0, %s1674_s7  ;;  %p1599_p11 = scmp.lt.s32.totalorder (%p2316_p5), %s1598_s23, 2 }
  0x19   : > { %v266_v0 = vld [vmem:[%s2334_s10] sm:$0xff]  ;;  %v268_v1 = vld [vmem:[%s2334_s10 + $0x10] sm:$0xff]  ;;  %v267_v2 = vld [vmem:[%s2334_s10 + $0x8] sm:$0xff] }
  0x1a   : > { %v283_v3 = vsel %vm282_vm0, %v266_v0, 0.0  ;;  %v289_v4 = vsel %vm282_vm0, %v268_v1, 0.0  ;;  %v269_v5 = vld [vmem:[%s2334_s10 + $0x18] sm:$0xff]  ;;  %v286_v6 = vsel %vm282_vm0, %v267_v2, 0.0  ;;  %v2345_v8 = vld [vmem:[%s2334_s10 + $0x20] sm:$0xff]  ;;  %v2348_v9 = vld [vmem:[%s2334_s10 + $0x28] sm:$0xff] }
  0x1b   : > { %284 = vadd.xlane.f32.xlu0 %v283_v3  ;;  %290 = vadd.xlane.f32.xlu1 %v289_v4  ;;  %v292_v7 = vsel %vm282_vm0, %v269_v5, 0.0  ;;  %v295_v10 = vsel %vm282_vm0, %v2345_v8, 0.0  ;;  %v298_v11 = vsel %vm282_vm0, %v2348_v9, 0.0  ;;  %v2355_v12 = vld [vmem:[%s2334_s10 + $0x30] sm:$0xff]  ;;  %v2358_v13 = vld [vmem:[%s2334_s10 + $0x38] sm:$0xff]  ;;  %v2365_v16 = vld [vmem:[%s2334_s10 + $0x40] sm:$0xff] }
  0x1c   : > { %v301_v14 = vsel %vm282_vm0, %v2355_v12, 0.0  ;;  %v304_v15 = vsel %vm282_vm0, %v2358_v13, 0.0  ;;  %v2368_v17 = vld [vmem:[%s2334_s10 + $0x48] sm:$0xff]  ;;  %v307_v18 = vsel %vm282_vm0, %v2365_v16, 0.0  ;;  %v2375_v20 = vld [vmem:[%s2334_s10 + $0x50] sm:$0xff]  ;;  %v2378_v21 = vld [vmem:[%s2334_s10 + $0x58] sm:$0xff] }
  0x1d   : > { %v310_v19 = vsel %vm282_vm0, %v2368_v17, 0.0  ;;  %v313_v22 = vsel %vm282_vm0, %v2375_v20, 0.0  ;;  %v316_v23 = vsel %vm282_vm0, %v2378_v21, 0.0  ;;  %v2385_v24 = vld [vmem:[%s2334_s10 + $0x60] sm:$0xff]  ;;  %v2388_v25 = vld [vmem:[%s2334_s10 + $0x68] sm:$0xff]  ;;  %v2395_v28 = vld [vmem:[%s2334_s10 + $0x70] sm:$0xff] }
  0x1e   : > { %v319_v26 = vsel %vm282_vm0, %v2385_v24, 0.0  ;;  %v322_v27 = vsel %vm282_vm0, %v2388_v25, 0.0  ;;  %v2398_v29 = vld [vmem:[%s2334_s10 + $0x78] sm:$0xff]  ;;  %v325_v30 = vsel %vm282_vm0, %v2395_v28, 0.0 }
  0x1f   : > { %287 = vadd.xlane.f32.xlu0 %v286_v6  ;;  %293 = vadd.xlane.f32.xlu1 %v292_v7  ;;  %v328_v31 = vsel %vm282_vm0, %v2398_v29, 0.0 }
  0x23   : > { %296 = vadd.xlane.f32.xlu0 %v295_v10  ;;  %299 = vadd.xlane.f32.xlu1 %v298_v11 }
  0x27   : > { %302 = vadd.xlane.f32.xlu0 %v301_v14  ;;  %305 = vadd.xlane.f32.xlu1 %v304_v15 }
  0x2b   : > { %308 = vadd.xlane.f32.xlu0 %v307_v18  ;;  %311 = vadd.xlane.f32.xlu1 %v310_v19 }
  0x2f   : > { %314 = vadd.xlane.f32.xlu0 %v313_v22  ;;  %317 = vadd.xlane.f32.xlu1 %v316_v23 }
  0x33   : > { %320 = vadd.xlane.f32.xlu0 %v319_v26  ;;  %323 = vadd.xlane.f32.xlu1 %v322_v27 }
  0x37   : > { %326 = vadd.xlane.f32.xlu0 %v325_v30  ;;  %329 = vadd.xlane.f32.xlu1 %v328_v31 }
  0xa8   : > { %v285_v33 = vpop.xlane.xlu0 %284  ;;  %v291_v34 = vpop.xlane.xlu1 %290 }
  0xa9   : > { %v332_v35 = vmul.f32 0.015625, %v285_v33  ;;  %v334_v36 = vmul.f32 0.015625, %v291_v34 }
  0xab   : > { %v2404_v37 = vsub.f32 %v266_v0, %v332_v35  ;;  %v2406_v38 = vsub.f32 %v268_v1, %v334_v36 }
  0xac   : > { %v288_v39 = vpop.xlane.xlu0 %287  ;;  %v294_v40 = vpop.xlane.xlu1 %293 }
  0xad   : > { %v333_v41 = vmul.f32 0.015625, %v288_v39  ;;  %v335_v42 = vmul.f32 0.015625, %v294_v40  ;;  %v364_v43 = vmul.f32 %v2404_v37, %v2404_v37  ;;  %v366_v44 = vmul.f32 %v2406_v38, %v2406_v38 }
  0xaf   : > { %v2412_v45 = vsub.f32 %v267_v2, %v333_v41  ;;  %v2414_v46 = vsub.f32 %v269_v5, %v335_v42  ;;  %v380_v47 = vsel %vm282_vm0, %v364_v43, 0.0  ;;  %v386_v50 = vsel %vm282_vm0, %v366_v44, 0.0 }
  0xb0   : > { %381 = vadd.xlane.f32.xlu0 %v380_v47  ;;  %v297_v48 = vpop.xlane.xlu0 %296  ;;  %v300_v49 = vpop.xlane.xlu1 %299 }
  0xb1   : > { %v336_v51 = vmul.f32 0.015625, %v297_v48  ;;  %v337_v52 = vmul.f32 0.015625, %v300_v49  ;;  %v365_v53 = vmul.f32 %v2412_v45, %v2412_v45  ;;  %v367_v54 = vmul.f32 %v2414_v46, %v2414_v46 }
  0xb3   : > { %v2423_v55 = vsub.f32 %v2345_v8, %v336_v51  ;;  %v2426_v56 = vsub.f32 %v2348_v9, %v337_v52  ;;  %v383_v57 = vsel %vm282_vm0, %v365_v53, 0.0  ;;  %v389_v60 = vsel %vm282_vm0, %v367_v54, 0.0  ;;  %v258_v53 = vld [vmem:[%s2978_s4 + $0x8] sm:$0xff]  ;;  %v257_v54 = vld [vmem:[%s2978_s4] sm:$0xff] }
  0xb4   : > { %387 = vadd.xlane.f32.xlu0 %v386_v50  ;;  %384 = vadd.xlane.f32.xlu1 %v383_v57  ;;  %v303_v58 = vpop.xlane.xlu0 %302  ;;  %v306_v59 = vpop.xlane.xlu1 %305  ;;  %v259_v57 = vld [vmem:[%s2978_s4 + $0x10] sm:$0xff] }
  0xb5   : > { %v338_v61 = vmul.f32 0.015625, %v303_v58  ;;  %v339_v62 = vmul.f32 0.015625, %v306_v59  ;;  %v368_v63 = vmul.f32 %v2423_v55, %v2423_v55  ;;  %v369_v0 = vmul.f32 %v2426_v56, %v2426_v56  ;;  %v260_v58 = vld [vmem:[%s2978_s4 + $0x18] sm:$0xff]  ;;  %v2509_v59 = vld [vmem:[%s2334_s10 + $0x88] sm:$0xff] }
  0xb7   : > { %v2435_v1 = vsub.f32 %v2355_v12, %v338_v61  ;;  %v2438_v2 = vsub.f32 %v2358_v13, %v339_v62  ;;  %v392_v3 = vsel %vm282_vm0, %v368_v63, 0.0  ;;  %v395_v6 = vsel %vm282_vm0, %v369_v0, 0.0  ;;  %v2514_v61 = vld [vmem:[%s2334_s10 + $0xb0] sm:$0xff]  ;;  %v2519_v63 = vld [vmem:[%s2334_s10 + $0x80] sm:$0xff] }
  0xb8   : > { %390 = vadd.xlane.f32.xlu1 %v389_v60  ;;  %393 = vadd.xlane.f32.xlu0 %v392_v3  ;;  %v309_v4 = vpop.xlane.xlu0 %308  ;;  %v312_v5 = vpop.xlane.xlu1 %311  ;;  %v985_v60 = vsel %vm282_vm0, %v2509_v59, 0.0  ;;  %v1000_v62 = vsel %vm282_vm0, %v2514_v61, 0.0  ;;  %v982_v0 = vsel %vm282_vm0, %v2519_v63, 0.0  ;;  %v2524_v3 = vld [vmem:[%s2334_s10 + $0x90] sm:$0xff] }
  0xb9   : > { %v340_v7 = vmul.f32 0.015625, %v309_v4  ;;  %v341_v8 = vmul.f32 0.015625, %v312_v5  ;;  %v370_v9 = vmul.f32 %v2435_v1, %v2435_v1  ;;  %v371_v10 = vmul.f32 %v2438_v2, %v2438_v2  ;;  %v2531_v5 = vld [vmem:[%s2975_s1] sm:$0xff] }
  0xba   : > { %v988_v4 = vsel %vm282_vm0, %v2524_v3, 0.0  ;;  %1833 = vmatprep.mubr.msk.f32.mxu0 %vm282_vm0, %v2531_v5 }
  0xbb   : > { %v2447_v11 = vsub.f32 %v2365_v16, %v340_v7  ;;  %v2450_v12 = vsub.f32 %v2368_v17, %v341_v8  ;;  %v398_v13 = vsel %vm282_vm0, %v370_v9, 0.0  ;;  %v401_v18 = vsel %vm282_vm0, %v371_v10, 0.0  ;;  %v2541_v8 = vld [vmem:[%s2334_s10 + $0xa0] sm:$0xff]  ;;  %v2546_v10 = vld [vmem:[%s2334_s10 + $0xa8] sm:$0xff] }
  0xbc   : > { %396 = vadd.xlane.f32.xlu1 %v395_v6  ;;  %399 = vadd.xlane.f32.xlu0 %v398_v13  ;;  %v315_v14 = vpop.xlane.xlu0 %314  ;;  %v318_v15 = vpop.xlane.xlu1 %317  ;;  %v2534_v6 = vld [vmem:[%s2334_s10 + $0x98] sm:$0xff]  ;;  %v994_v9 = vsel %vm282_vm0, %v2541_v8, 0.0  ;;  %v261_v13 = vld [vmem:[%s2978_s4 + $0x20] sm:$0xff] }
  0xbd   : > { %v342_v19 = vmul.f32 0.015625, %v315_v14  ;;  %v343_v22 = vmul.f32 0.015625, %v318_v15  ;;  %v372_v23 = vmul.f32 %v2447_v11, %v2447_v11  ;;  %v373_v16 = vmul.f32 %v2450_v12, %v2450_v12  ;;  %v2554_v15 = vld [vmem:[%s2334_s10 + $0xb8] sm:$0xff] }
  0xbe   : > { %v991_v7 = vsel %vm282_vm0, %v2534_v6, 0.0  ;;  %v997_v14 = vsel %vm282_vm0, %v2546_v10, 0.0 }
  0xbf   : > { %v2459_v26 = vsub.f32 %v2375_v20, %v342_v19  ;;  %v2462_v17 = vsub.f32 %v2378_v21, %v343_v22  ;;  %v404_v27 = vsel %vm282_vm0, %v372_v23, 0.0  ;;  %v407_v32 = vsel %vm282_vm0, %v373_v16, 0.0  ;;  %v262_v19 = vld [vmem:[%s2978_s4 + $0x28] sm:$0xff]  ;;  %v2567_v16 = vld [vmem:[%s2334_s10 + $0xd0] sm:$0xff] }
  0xc0   : > { %402 = vadd.xlane.f32.xlu1 %v401_v18  ;;  %405 = vadd.xlane.f32.xlu0 %v404_v27  ;;  %v321_v30 = vpop.xlane.xlu0 %320  ;;  %v324_v31 = vpop.xlane.xlu1 %323  ;;  %v1003_v18 = vsel %vm282_vm0, %v2554_v15, 0.0  ;;  %v2562_v22 = vld [vmem:[%s2334_s10 + $0xc8] sm:$0xff]  ;;  %v1012_v27 = vsel %vm282_vm0, %v2567_v16, 0.0 }
  0xc1   : > { %v344_v33 = vmul.f32 0.015625, %v321_v30  ;;  %v345_v34 = vmul.f32 0.015625, %v324_v31  ;;  %v374_v35 = vmul.f32 %v2459_v26, %v2459_v26  ;;  %v375_v20 = vmul.f32 %v2462_v17, %v2462_v17  ;;  %v2572_v30 = vld [vmem:[%s2334_s10 + $0xe0] sm:$0xff] }
  0xc2   : > { %v1009_v23 = vsel %vm282_vm0, %v2562_v22, 0.0 }
  0xc3   : > { %v2471_v36 = vsub.f32 %v2385_v24, %v344_v33  ;;  %v2474_v21 = vsub.f32 %v2388_v25, %v345_v34  ;;  %v410_v39 = vsel %vm282_vm0, %v374_v35, 0.0  ;;  %v413_v42 = vsel %vm282_vm0, %v375_v20, 0.0  ;;  %v2577_v35 = vld [vmem:[%s2334_s10 + $0xf0] sm:$0xff] }
  0xc4   : > { %408 = vadd.xlane.f32.xlu1 %v407_v32  ;;  %411 = vadd.xlane.f32.xlu0 %v410_v39  ;;  %v327_v40 = vpop.xlane.xlu0 %326  ;;  %v330_v41 = vpop.xlane.xlu1 %329  ;;  %v1018_v33 = vsel %vm282_vm0, %v2572_v30, 0.0 }
  0xc5   : > { %v346_v43 = vmul.f32 0.015625, %v327_v40  ;;  %v347_v44 = vmul.f32 0.015625, %v330_v41  ;;  %v376_v47 = vmul.f32 %v2471_v36, %v2471_v36  ;;  %v377_v24 = vmul.f32 %v2474_v21, %v2474_v21 }
  0xc7   : > { %v2483_v48 = vsub.f32 %v2395_v28, %v346_v43  ;;  %v2486_v25 = vsub.f32 %v2398_v29, %v347_v44  ;;  %v416_v49 = vsel %vm282_vm0, %v376_v47, 0.0  ;;  %v419_v50 = vsel %vm282_vm0, %v377_v24, 0.0 }
  0xc8   : > { %414 = vadd.xlane.f32.xlu1 %v413_v42  ;;  %417 = vadd.xlane.f32.xlu0 %v416_v49  ;;  %v1024_v42 = vsel %vm282_vm0, %v2577_v35, 0.0 }
  0xc9   : > { %v378_v51 = vmul.f32 %v2483_v48, %v2483_v48  ;;  %v379_v52 = vmul.f32 %v2486_v25, %v2486_v25 }
  0xcb   : > { %v422_v28 = vsel %vm282_vm0, %v378_v51, 0.0  ;;  %v425_v29 = vsel %vm282_vm0, %v379_v52, 0.0 }
  0xcc   : > { %420 = vadd.xlane.f32.xlu1 %v419_v50  ;;  %423 = vadd.xlane.f32.xlu0 %v422_v28 }
  0xd0   : > { %426 = vadd.xlane.f32.xlu1 %v425_v29 }
  0xe1   : > { %499 = vperm.xlu1 %2074, %v258_v53  }
  0xe2   : > { %494 = vperm.xlu0 %2073, %v257_v54  }
  0xe5   : > { %504 = vperm.xlu1 %2074, %v259_v57  }
  0xe9   : > { %509 = vperm.xlu1 %2074, %v260_v58  }
 0x101   : > { %986 = vadd.xlane.f32.xlu0 %v985_v60 }
 0x105   : > { %1001 = vadd.xlane.f32.xlu0 %v1000_v62 }
 0x10d   : > { %983 = vadd.xlane.f32.xlu1 %v982_v0 }
 0x111   : > { %989 = vadd.xlane.f32.xlu1 %v988_v4 }
 0x115   : > { %992 = vadd.xlane.f32.xlu1 %v991_v7  ;;  %v2582_v7 = vld [vmem:[%s2334_s10 + $0xc0] sm:$0xff] }
 0x119   : > { %995 = vadd.xlane.f32.xlu1 %v994_v9 }
 0x11b   : > { %714 = vperm.xlu0 %2073, %v261_v13  }
 0x11d   : > { %998 = vadd.xlane.f32.xlu1 %v997_v14 }
 0x121   : > { %1004 = vadd.xlane.f32.xlu1 %v1003_v18 }
 0x132   : > { %719 = vperm.xlu1 %2074, %v262_v19  }
 0x13a   : > { %1010 = vadd.xlane.f32.xlu0 %v1009_v23 }
 0x13d   : > { %v382_v31 = vpop.xlane.xlu0 %381 }
 0x13e   : > { %v428_v32 = vmul.f32 0.015625, %v382_v31  ;;  %1013 = vadd.xlane.f32.xlu0 %v1012_v27 }
 0x140   : > { %v444_v34 = vadd.f32 1e-05, %v428_v32  ;;  %v1006_v32 = vsel %vm282_vm0, %v2582_v7, 0.0 }
 0x141   : > { %v385_v20 = vpop.xlane.xlu1 %384  ;;  %v388_v39 = vpop.xlane.xlu0 %387 }
 0x142   : > { %v429_v40 = vmul.f32 0.015625, %v385_v20  ;;  %v430_v41 = vmul.f32 0.015625, %v388_v39  ;;  %1019 = vadd.xlane.f32.xlu0 %v1018_v33  ;;  %2075 = vrsqrt.f32 %v444_v34 }
 0x144   : > { %v445_v43 = vadd.f32 1e-05, %v429_v40  ;;  %v446_v44 = vadd.f32 1e-05, %v430_v41 }
 0x145   : > { %v391_v47 = vpop.xlane.xlu1 %390  ;;  %v394_v24 = vpop.xlane.xlu0 %393 }
 0x146   : > { %2077 = vrsqrt.f32 %v445_v43  ;;  %v431_v49 = vmul.f32 0.015625, %v391_v47  ;;  %v432_v50 = vmul.f32 0.015625, %v394_v24  ;;  %1025 = vadd.xlane.f32.xlu0 %v1024_v42  ;;  %v2606_v47 = vld [vmem:[%s2334_s10 + $0xe8] sm:$0xff] }
 0x147   : > { %2079 = vrsqrt.f32 %v446_v44 }
 0x148   : > { %v447_v51 = vadd.f32 1e-05, %v431_v49  ;;  %v448_v52 = vadd.f32 1e-05, %v432_v50  ;;  %v1021_v50 = vsel %vm282_vm0, %v2606_v47, 0.0 }
 0x149   : > { %v397_v28 = vpop.xlane.xlu1 %396  ;;  %v400_v53 = vpop.xlane.xlu0 %399 }
 0x14a   : > { %2081 = vrsqrt.f32 %v447_v51  ;;  %v433_v29 = vmul.f32 0.015625, %v397_v28  ;;  %v434_v60 = vmul.f32 0.015625, %v400_v53  ;;  %v2615_v28 = vld [vmem:[%s2334_s10 + $0xf8] sm:$0xff] }
 0x14b   : > { %2083 = vrsqrt.f32 %v448_v52 }
 0x14c   : > { %v449_v54 = vadd.f32 1e-05, %v433_v29  ;;  %v2076_v58 = vpop.eup %2075  ;;  %v450_v19 = vadd.f32 1e-05, %v434_v60 }
 0x14d   : > { %v403_v57 = vpop.xlane.xlu1 %402  ;;  %v476_v13 = vmul.f32 %v2076_v58, %v2404_v37  ;;  %v406_v27 = vpop.xlane.xlu0 %405  ;;  %v2595_v37 = vld [vmem:[%s2334_s10 + $0xd8] sm:$0xff] }
 0x14e   : > { %2085 = vrsqrt.f32 %v449_v54  ;;  %v435_v62 = vmul.f32 0.015625, %v403_v57  ;;  %v436_v39 = vmul.f32 0.015625, %v406_v27  ;;  %v1015_v42 = vsel %vm282_vm0, %v2595_v37, 0.0 }
 0x150   : > { %v2078_v0 = vpop.eup %2077  ;;  %v451_v4 = vadd.f32 1e-05, %v435_v62 }
 0x151   : > { %v409_v9 = vpop.xlane.xlu1 %408  ;;  %v477_v14 = vmul.f32 %v2078_v0, %v2412_v45  ;;  %v2080_v18 = vpop.eup %2079 }
 0x152   : > { %2087 = vrsqrt.f32 %v451_v4  ;;  %v437_v34 = vmul.f32 0.015625, %v409_v9  ;;  %v478_v45 = vmul.f32 %v2080_v18, %v2406_v38  ;;  %v412_v49 = vpop.xlane.xlu0 %411 }
 0x153   : > { %v1913_v31 = vpack.c.bf16 %v477_v14, %v476_v13  ;;  %2089 = vrsqrt.f32 %v450_v19  ;;  %v438_v54 = vmul.f32 0.015625, %v412_v49 }
 0x154   : > { %v2082_v33 = vpop.eup %2081  ;;  %v453_v44 = vadd.f32 1e-05, %v437_v34 }
 0x155   : > { %1915 = vmatprep.subr.msk.bf16.mxu0 %vm2588_vm1, %v1913_v31  ;;  %v479_v20 = vmul.f32 %v2082_v33, %v2414_v46  ;;  %v2084_v40 = vpop.eup %2083  ;;  %v415_v24 = vpop.xlane.xlu1 %414  ;;  %v452_v46 = vadd.f32 1e-05, %v436_v39  ;;  %v454_v62 = vadd.f32 1e-05, %v438_v54  ;;  %v2667_v54 = vld [vmem:[%s2975_s1 + $0x8] sm:$0xff] }
 0x156   : > { %1007 = vadd.xlane.f32.xlu1 %v1006_v32  ;;  %1918 = vmatpush3.bf16.xpose.msk.msra.mxu0 %vm2588_vm1, %v1913_v31  ;;  %v480_v51 = vmul.f32 %v2084_v40, %v2423_v55  ;;  %2091 = vrsqrt.f32 %v453_v44  ;;  %v439_v52 = vmul.f32 0.015625, %v415_v24  ;;  %v418_v0 = vpop.xlane.xlu0 %417 }
 0x157   : > { %v1919_v41 = vpack.c.bf16 %v479_v20, %v478_v45  ;;  %2093 = vrsqrt.f32 %v452_v46  ;;  %v440_v18 = vmul.f32 0.015625, %v418_v0 }
 0x158   : > { %v2086_v43 = vpop.eup %2085  ;;  %v455_v55 = vadd.f32 1e-05, %v439_v52 }
 0x159   : > { %1921 = vmatprep.subr.msk.bf16.mxu0 %vm2588_vm1, %v1919_v41  ;;  %v481_v38 = vmul.f32 %v2086_v43, %v2426_v56  ;;  %v1027_v56 = vsel %vm282_vm0, %v2615_v28, 0.0  ;;  %v421_v58 = vpop.xlane.xlu1 %420  ;;  %v456_v32 = vadd.f32 1e-05, %v440_v18 }
 0x15a   : > { %1016 = vadd.xlane.f32.xlu1 %v1015_v42  ;;  %2095 = vrsqrt.f32 %v455_v55  ;;  %v441_v9 = vmul.f32 0.015625, %v421_v58  ;;  %v424_v33 = vpop.xlane.xlu0 %423  ;;  %v2686_v58 = vld [vmem:[%s2975_s1 + $0x18] sm:$0xff] }
 0x15b   : > { %v1925_v29 = vpack.c.bf16 %v481_v38, %v480_v51  ;;  %2097 = vrsqrt.f32 %v454_v62  ;;  %v442_v39 = vmul.f32 0.015625, %v424_v33 }
 0x15c   : > { %v2088_v53 = vpop.eup %2087  ;;  %v457_v27 = vadd.f32 1e-05, %v441_v9 }
 0x15d   : > { %v2090_v57 = vpop.eup %2089  ;;  %v483_v60 = vmul.f32 %v2088_v53, %v2438_v2  ;;  %v427_v2 = vpop.xlane.xlu1 %426  ;;  %v458_v42 = vadd.f32 1e-05, %v442_v39 }
 0x15e   : > { %1022 = vadd.xlane.f32.xlu1 %v1021_v50  ;;  %1924 = vmatpush3.bf16.xpose.msk.msra.mxu0 %vm2588_vm1, %v1919_v41  ;;  %v482_v4 = vmul.f32 %v2090_v57, %v2435_v1  ;;  %2099 = vrsqrt.f32 %v457_v27  ;;  %v443_v34 = vmul.f32 0.015625, %v427_v2 }
 0x15f   : > { %1927 = vmatprep.subr.msk.bf16.mxu0 %vm2588_vm1, %v1925_v29  ;;  %2101 = vrsqrt.f32 %v456_v32 }
 0x160   : > { %v1931_v13 = vpack.c.bf16 %v483_v60, %v482_v4  ;;  %v2092_v14 = vpop.eup %2091  ;;  %v459_v41 = vadd.f32 1e-05, %v443_v34 }
 0x161   : > { %v2094_v19 = vpop.eup %2093  ;;  %v485_v31 = vmul.f32 %v2092_v14, %v2450_v12 }
 0x162   : > { %1028 = vadd.xlane.f32.xlu1 %v1027_v56  ;;  %v484_v1 = vmul.f32 %v2094_v19, %v2447_v11  ;;  %2103 = vrsqrt.f32 %v459_v41  ;;  %v2672_v56 = vld [vmem:[%s2975_s1 + $0x10] sm:$0xff] }
 0x163   : > { %2105 = vrsqrt.f32 %v458_v42 }
 0x164   : > { %v1937_v45 = vpack.c.bf16 %v485_v31, %v484_v1  ;;  %v2096_v20 = vpop.eup %2095 }
 0x165   : > { %v2098_v40 = vpop.eup %2097  ;;  %v487_v12 = vmul.f32 %v2096_v20, %v2462_v17 }
 0x166   : > { %1930 = vmatpush3.bf16.xpose.msk.msra.mxu0 %vm2588_vm1, %v1925_v29  ;;  %v486_v43 = vmul.f32 %v2098_v40, %v2459_v26 }
 0x167   : > { %1933 = vmatprep.subr.msk.bf16.mxu0 %vm2588_vm1, %v1931_v13 }
 0x168   : > { %v1943_v11 = vpack.c.bf16 %v487_v12, %v486_v43  ;;  %v2100_v44 = vpop.eup %2099 }
 0x169   : > { %v2102_v24 = vpop.eup %2101  ;;  %v489_v38 = vmul.f32 %v2100_v44, %v2474_v21  ;;  %v2655_v21 = vpop.permute.xlu0 %494 }
 0x16a   : > { %v488_v46 = vmul.f32 %v2102_v24, %v2471_v36  ;;  %v2653_v36 = vpop.permute.xlu1 %499 }
 0x16c   : > { %v1949_v49 = vpack.c.bf16 %v489_v38, %v488_v46  ;;  %v2104_v17 = vpop.eup %2103 }
 0x16d   : > { %v2106_v26 = vpop.eup %2105  ;;  %v491_v50 = vmul.f32 %v2104_v17, %v2486_v25 }
 0x16e   : > { %1936 = vmatpush3.bf16.xpose.msk.msra.mxu0 %vm2588_vm1, %v1931_v13  ;;  %v490_v51 = vmul.f32 %v2106_v26, %v2483_v48  ;;  %v2659_v29 = vpop.permute.xlu1 %504 }
 0x16f   : > { %1939 = vmatprep.subr.msk.bf16.mxu0 %vm2588_vm1, %v1937_v45 }
 0x170   : > { %v1955_v52 = vpack.c.bf16 %v491_v50, %v490_v51 }
 0x172   : > { %v2676_v55 = vpop.permute.xlu1 %509 }
 0x176   : > { %1942 = vmatpush3.bf16.xpose.msk.msra.mxu0 %vm2588_vm1, %v1937_v45 }
 0x177   : > { %1945 = vmatprep.subr.msk.bf16.mxu0 %vm2588_vm1, %v1943_v11 }
 0x17e   : > { %1948 = vmatpush3.bf16.xpose.msk.msra.mxu0 %vm2588_vm1, %v1943_v11 }
 0x17f   : > { %1951 = vmatprep.subr.msk.bf16.mxu0 %vm2588_vm1, %v1949_v49 }
 0x186   : > { %1954 = vmatpush3.bf16.xpose.msk.msra.mxu0 %vm2588_vm1, %v1949_v49 }
 0x187   : > { %1957 = vmatprep.subr.msk.bf16.mxu0 %vm2588_vm1, %v1955_v52 }
 0x18e   : > { %1960 = vmatpush3.bf16.xpose.msk.msra.mxu0 %vm2588_vm1, %v1955_v52  ;;  %v987_v53 = vpop.xlane.xlu0 %986 }
 0x18f   : > { %v1031_v25 = vmul.f32 0.015625, %v987_v53 }
 0x191   : > { %v2662_v48 = vsub.f32 %v2509_v59, %v1031_v25 }
 0x192   : > { %v1002_v27 = vpop.xlane.xlu0 %1001 }
 0x193   : > { %v1063_v57 = vmul.f32 %v2662_v48, %v2662_v48  ;;  %v1036_v31 = vmul.f32 0.015625, %v1002_v27 }
 0x195   : > { %1834 = vmatmul.mubr.msk.f32.vlgmr.msra.gmra.mrb[0].mxu0 %vm282_vm0, %v2667_v54  ;;  %v1081_v59 = vsel %vm282_vm0, %v1063_v57, 0.0 }
 0x196   : > { %1836 = vmatprep.mubr.msk.f32.mxu0 %vm282_vm0, %v2672_v56  ;;  %1082 = vadd.xlane.f32.xlu1 %v1081_v59 }
 0x199   : > { %1837 = vmatmul.mubr.msk.f32.gmra.mrb[2].mxu0 %vm282_vm0, %v2686_v58 }
 0x19a   : > { %v984_v60 = vpop.xlane.xlu1 %983  ;;  %v2732_v49 = vpop.permute.xlu0 %714 }
 0x19b   : > { %v1030_v62 = vmul.f32 0.015625, %v984_v60 }
 0x19d   : > { %v2691_v0 = vsub.f32 %v2519_v63, %v1030_v62 }
 0x19e   : > { %v990_v4 = vpop.xlane.xlu1 %989 }
 0x19f   : > { %v1032_v9 = vmul.f32 0.015625, %v990_v4  ;;  %v1062_v13 = vmul.f32 %v2691_v0, %v2691_v0 }
 0x1a1   : > { %v2696_v14 = vsub.f32 %v2524_v3, %v1032_v9  ;;  %v1078_v18 = vsel %vm282_vm0, %v1062_v13, 0.0  ;;  %v2706_v3 = vsub.f32 %v2514_v61, %v1036_v31 }
 0x1a2   : > { %v993_v19 = vpop.xlane.xlu1 %992  ;;  %1079 = vadd.xlane.f32.xlu0 %v1078_v18 }
 0x1a3   : > { %v1033_v2 = vmul.f32 0.015625, %v993_v19  ;;  %v1064_v32 = vmul.f32 %v2696_v14, %v2696_v14  ;;  %v1068_v12 = vmul.f32 %v2706_v3, %v2706_v3 }
 0x1a5   : > { %v2702_v63 = vsub.f32 %v2534_v6, %v1033_v2  ;;  %v1084_v33 = vsel %vm282_vm0, %v1064_v32, 0.0  ;;  %v1096_v44 = vsel %vm282_vm0, %v1068_v12, 0.0 }
 0x1a6   : > { %v996_v1 = vpop.xlane.xlu1 %995  ;;  %1085 = vadd.xlane.f32.xlu0 %v1084_v33 }
 0x1a7   : > { %v1034_v34 = vmul.f32 0.015625, %v996_v1  ;;  %v1065_v45 = vmul.f32 %v2702_v63, %v2702_v63 }
 0x1a9   : > { %v2711_v20 = vsub.f32 %v2541_v8, %v1034_v34  ;;  %v1087_v39 = vsel %vm282_vm0, %v1065_v45, 0.0 }
 0x1aa   : > { %v999_v40 = vpop.xlane.xlu1 %998  ;;  %1088 = vadd.xlane.f32.xlu1 %v1087_v39 }
 0x1ab   : > { %v1035_v6 = vmul.f32 0.015625, %v999_v40  ;;  %v1066_v41 = vmul.f32 %v2711_v20, %v2711_v20 }
 0x1ad   : > { %v2719_v61 = vsub.f32 %v2546_v10, %v1035_v6  ;;  %v1090_v42 = vsel %vm282_vm0, %v1066_v41, 0.0 }
 0x1ae   : > { %v1005_v43 = vpop.xlane.xlu1 %1004  ;;  %1091 = vadd.xlane.f32.xlu0 %v1090_v42 }
 0x1af   : > { %v1037_v8 = vmul.f32 0.015625, %v1005_v43  ;;  %v1067_v11 = vmul.f32 %v2719_v61, %v2719_v61 }
 0x1b1   : > { %v2726_v24 = vsub.f32 %v2554_v15, %v1037_v8  ;;  %v1093_v38 = vsel %vm282_vm0, %v1067_v11, 0.0 }
 0x1b2   : > { %1094 = vadd.xlane.f32.xlu1 %v1093_v38  ;;  %1097 = vadd.xlane.f32.xlu0 %v1096_v44  ;;  %v2740_v53 = vpop.permute.xlu1 %719  ;;  %v264_v44 = vld [vmem:[%s2978_s4 + $0x38] sm:$0xff]  ;;  %v263_v38 = vld [vmem:[%s2978_s4 + $0x30] sm:$0xff] }
 0x1b3   : > { %v1069_v10 = vmul.f32 %v2726_v24, %v2726_v24 }
 0x1b5   : > { %v1099_v46 = vsel %vm282_vm0, %v1069_v10, 0.0  ;;  %v254_v10 = vld [vmem:[%s2976_s2] sm:$0xff] }
 0x1b6   : > { %1100 = vadd.xlane.f32.xlu1 %v1099_v46  ;;  %1847 = vmatprep.mubr.msk.f32.mxu1 %vm722_vm2, %v254_v10 }
 0x1b7   : > { %1903 = vmatprep.mubr.msk.f32.mxu0 %vm722_vm2, %v254_v10 }
 0x1c7   : > { %v1011_v17 = vpop.xlane.xlu0 %1010 }
 0x1c8   : > { %v1039_v26 = vmul.f32 0.015625, %v1011_v17 }
 0x1ca   : > { %v2735_v50 = vsub.f32 %v2562_v22, %v1039_v26 }
 0x1cb   : > { %v1014_v52 = vpop.xlane.xlu0 %1013 }
 0x1cc   : > { %v1071_v15 = vmul.f32 %v2735_v50, %v2735_v50  ;;  %v1040_v25 = vmul.f32 0.015625, %v1014_v52 }
 0x1ce   : > { %v1105_v51 = vsel %vm282_vm0, %v1071_v15, 0.0  ;;  %v2743_v60 = vsub.f32 %v2567_v16, %v1040_v25 }
 0x1cf   : > { %1106 = vadd.xlane.f32.xlu1 %v1105_v51  ;;  %v1020_v57 = vpop.xlane.xlu0 %1019 }
 0x1d0   : > { %v1042_v4 = vmul.f32 0.015625, %v1020_v57  ;;  %v1072_v18 = vmul.f32 %v2743_v60, %v2743_v60 }
 0x1d2   : > { %v2753_v2 = vsub.f32 %v2572_v30, %v1042_v4 }
 0x1d3   : > { %v1026_v9 = vpop.xlane.xlu0 %1025 }
 0x1d4   : > { %v1044_v31 = vmul.f32 0.015625, %v1026_v9  ;;  %v1074_v30 = vmul.f32 %v2753_v2, %v2753_v2 }
 0x1d6   : > { %v2763_v45 = vsub.f32 %v2577_v35, %v1044_v31  ;;  %v1114_v12 = vsel %vm282_vm0, %v1074_v30, 0.0 }
 0x1d8   : > { %v1076_v35 = vmul.f32 %v2763_v45, %v2763_v45 }
 0x1da   : > { %v1120_v8 = vsel %vm282_vm0, %v1076_v35, 0.0 }
 0x1e3   : > { %v1008_v59 = vpop.xlane.xlu1 %1007 }
 0x1e4   : > { %v1038_v62 = vmul.f32 0.015625, %v1008_v59 }
 0x1e6   : > { %v2746_v22 = vsub.f32 %v2582_v7, %v1038_v62  ;;  %v1108_v7 = vsel %vm282_vm0, %v1072_v18, 0.0 }
 0x1e7   : > { %v1017_v13 = vpop.xlane.xlu1 %1016 }
 0x1e8   : > { %v1041_v19 = vmul.f32 0.015625, %v1017_v13  ;;  %v1070_v27 = vmul.f32 %v2746_v22, %v2746_v22 }
 0x1ea   : > { %v2756_v16 = vsub.f32 %v2595_v37, %v1041_v19  ;;  %v1102_v32 = vsel %vm282_vm0, %v1070_v27, 0.0 }
 0x1eb   : > { %v1023_v33 = vpop.xlane.xlu1 %1022  ;;  %1103 = vadd.xlane.f32.xlu0 %v1102_v32 }
 0x1ec   : > { %v1043_v1 = vmul.f32 0.015625, %v1023_v33  ;;  %v1073_v34 = vmul.f32 %v2756_v16, %v2756_v16 }
 0x1ee   : > { %v2768_v39 = vsub.f32 %v2606_v47, %v1043_v1  ;;  %v1111_v37 = vsel %vm282_vm0, %v1073_v34, 0.0 }
 0x1ef   : > { %v1029_v40 = vpop.xlane.xlu1 %1028  ;;  %1112 = vadd.xlane.f32.xlu1 %v1111_v37  ;;  %1109 = vadd.xlane.f32.xlu0 %v1108_v7 }
 0x1f0   : > { %v1045_v6 = vmul.f32 0.015625, %v1029_v40  ;;  %v1075_v41 = vmul.f32 %v2768_v39, %v2768_v39 }
 0x1f2   : > { %v2777_v42 = vsub.f32 %v2615_v28, %v1045_v6  ;;  %v1117_v47 = vsel %vm282_vm0, %v1075_v41, 0.0  ;;  %v265_v28 = vld [vmem:[%s2978_s4 + $0x40] sm:$0x1] }
 0x1f3   : > { %1118 = vadd.xlane.f32.xlu1 %v1117_v47  ;;  %1115 = vadd.xlane.f32.xlu0 %v1114_v12 }
 0x1f4   : > { %v1077_v43 = vmul.f32 %v2777_v42, %v2777_v42 }
 0x1f6   : > { %v1123_v11 = vsel %vm282_vm0, %v1077_v43, 0.0 }
 0x1f7   : > { %1124 = vadd.xlane.f32.xlu1 %v1123_v11  ;;  %1121 = vadd.xlane.f32.xlu0 %v1120_v8 }
 0x208   : > { %945 = vperm.xlu1 %2074, %v264_v44  }
 0x20c   : > { %957 = vperm.xlu1 %2074, %v265_v28  }
 0x20d   : > { %841 = vperm.xlu0 %2073, %v263_v38  }
 0x268   : > { %v1835_v46 = vpop.f32.mrb[0].mxu0 }
 0x269   : > { %v644_v17 = vadd.f32 %v1835_v46, %v2653_v36  ;;  %v638_v26 = vpop.f32.mrb[1].mxu0 }
 0x26a   : > { %v639_v15 = vadd.f32 %v638_v26, %v2655_v21 }
 0x26b   : > { %v663_v51 = vmul.f32 1.442695, %v644_v17  ;;  %vm658_vm3 = vcmp.gt.f32.partialorder %v644_v17, 0.0 }
 0x26c   : > { %v661_v52 = vmul.f32 1.442695, %v639_v15  ;;  %v1838_v25 = vpop.f32.mrb[2].mxu0  ;;  %vm657_vm4 = vcmp.gt.f32.partialorder %v639_v15, 0.0 }
 0x26d   : > { %2107 = vpow2.f32 %v663_v51  ;;  %v654_v57 = vadd.f32 %v1838_v25, %v2676_v55  ;;  %v648_v59 = vpop.f32.mrb[3].mxu0 }
 0x26e   : > { %2109 = vpow2.f32 %v661_v52  ;;  %v649_v62 = vadd.f32 %v648_v59, %v2659_v29 }
 0x26f   : > { %v667_v4 = vmul.f32 1.442695, %v654_v57  ;;  %vm660_vm6 = vcmp.gt.f32.partialorder %v654_v57, 0.0 }
 0x270   : > { %v665_v9 = vmul.f32 1.442695, %v649_v62  ;;  %vm659_vm5 = vcmp.gt.f32.partialorder %v649_v62, 0.0 }
 0x271   : > { %2111 = vpow2.f32 %v667_v4 }
 0x272   : > { %2113 = vpow2.f32 %v665_v9 }
 0x277   : > { %v2108_v13 = vpop.eup %2107 }
 0x278   : > { %v2110_v18 = vpop.eup %2109  ;;  %v1696_v19 = vadd.f32 -1.0, %v2108_v13 }
 0x279   : > { %v1695_v27 = vadd.f32 -1.0, %v2110_v18 }
 0x27a   : > { %v674_v31 = vsel %vm658_vm3, %v644_v17, %v1696_v19 }
 0x27b   : > { %v2112_v32 = vpop.eup %2111  ;;  %v673_v33 = vsel %vm657_vm4, %v639_v15, %v1695_v27 }
 0x27c   : > { %v2114_v7 = vpop.eup %2113  ;;  %v677_v1 = vadd.f32 %v674_v31, %v673_v33  ;;  %v1698_v34 = vadd.f32 -1.0, %v2112_v32 }
 0x27d   : > { %v1697_v30 = vadd.f32 -1.0, %v2114_v7 }
 0x27e   : > { %v676_v6 = vsel %vm660_vm6, %v654_v57, %v1698_v34 }
 0x27f   : > { %v675_v37 = vsel %vm659_vm5, %v649_v62, %v1697_v30 }
 0x280   : > { %v678_v40 = vadd.f32 %v677_v1, %v675_v37 }
 0x282   : > { %v679_v41 = vadd.f32 %v678_v40, %v676_v6  ;;  %v2244_v40 = vmov 0.0|0.0  }
 0x284   : > { %v680_v12 = vrot.slane %v679_v41, 4 }
 0x286   : > { %v681_v35 = vadd.f32 %v680_v12, %v679_v41 }
 0x288   : > { %v682_v47 = vrot.slane %v681_v35, 2 }
 0x28a   : > { %v683_v43 = vadd.f32 %v682_v47, %v681_v35 }
 0x28c   : > { %v684_v8 = vrot.slane %v683_v43, 1 }
 0x28e   : > { %v685_v11 = vadd.f32 %v684_v8, %v683_v43 }
 0x290   : > { %v687_v44 = vmul.f32 0.03125, %v685_v11 }
 0x292   : > { %v690_v28 = vsub.f32 %v675_v37, %v687_v44  ;;  %v688_v38 = vsub.f32 %v673_v33, %v687_v44  ;;  %v689_v10 = vsub.f32 %v674_v31, %v687_v44  ;;  %v691_v46 = vsub.f32 %v676_v6, %v687_v44  ;;  %v2805_v37 = vld [vmem:[%s2976_s2 + $0x8] sm:$0xff] }
 0x293   : > { %v2246_v6 = vmov 0.0  }
 0x294   : > { %v692_v17 = vmul.f32 %v688_v38, %v688_v38  ;;  %v693_v26 = vmul.f32 %v689_v10, %v689_v10  ;;  %v694_v15 = vmul.f32 %v690_v28, %v690_v28  ;;  %v695_v52 = vmul.f32 %v691_v46, %v691_v46 }
 0x296   : > { %v696_v51 = vadd.f32 %v693_v26, %v692_v17 }
 0x298   : > { %v697_v25 = vadd.f32 %v696_v51, %v694_v15 }
 0x29a   : > { %v698_v59 = vadd.f32 %v697_v25, %v695_v52 }
 0x29c   : > { %v699_v57 = vrot.slane %v698_v59, 4 }
 0x29e   : > { %v700_v62 = vadd.f32 %v699_v57, %v698_v59 }
 0x2a0   : > { %v701_v4 = vrot.slane %v700_v62, 2 }
 0x2a2   : > { %v702_v9 = vadd.f32 %v701_v4, %v700_v62 }
 0x2a4   : > { %v703_v13 = vrot.slane %v702_v9, 1 }
 0x2a6   : > { %v704_v18 = vadd.f32 %v703_v13, %v702_v9 }
 0x2a8   : > { %v705_v19 = vmul.f32 0.03125, %v704_v18 }
 0x2aa   : > { %v706_v27 = vadd.f32 1e-05, %v705_v19 }
 0x2ac   : > { %2115 = vrsqrt.f32 %v706_v27 }
 0x2b6   : > { %v2116_v32 = vpop.eup %2115 }
 0x2b7   : > { %v708_v33 = vmul.f32 %v2116_v32, %v688_v38  ;;  %v709_v31 = vmul.f32 %v2116_v32, %v689_v10  ;;  %v710_v7 = vmul.f32 %v2116_v32, %v690_v28  ;;  %v711_v1 = vmul.f32 %v2116_v32, %v691_v46  ;;  %v1083_v32 = vpop.xlane.xlu1 %1082 }
 0x2b9   : > { %v1961_v34 = vpack.c.bf16 %v709_v31, %v708_v33  ;;  %v1965_v30 = vpack.c.bf16 %v711_v1, %v710_v7  ;;  %v1127_v33 = vmul.f32 0.015625, %v1083_v32  ;;  %v1080_v31 = vpop.xlane.xlu0 %1079 }
 0x2ba   : > { %v1126_v1 = vmul.f32 0.015625, %v1080_v31 }
 0x2bb   : > { %1962 = vmatprep.subr.bf16.mxu1 %v1961_v34 }
 0x2bc   : > { %1964 = vmatpush3.bf16.msra.mxu1 %v1961_v34 }
 0x2bd   : > { %1966 = vmatprep.subr.bf16.mxu1 %v1965_v30 }
 0x2c0   : > { %1968 = vmatpush3.bf16.msra.mxu1 %v1965_v30  ;;  %v1143_v30 = vadd.f32 1e-05, %v1127_v33 }
 0x2c1   : > { %1969 = vmatprep.subr.bf16.mxu1 %v2244_v40 }
 0x2c3   : > { %1848 = vmatmul.mubr.msk.f32.vlgmr.msra.gmra.mrb[0].mxu1 %vm722_vm2, %v2805_v37 }
 0x2c4   : > { %1854 = vmatprep.mubr.msk.f32.mxu1 %vm2245_vm7, %v2246_v6 }
 0x396   : > { %v1849_v41 = vpop.f32.mrb[0].mxu1 }
 0x397   : > { %v801_v12 = vadd.f32 %v1849_v41, %v2740_v53  ;;  %v795_v35 = vpop.f32.mrb[1].mxu1 }
 0x398   : > { %v796_v47 = vadd.f32 %v795_v35, %v2732_v49 }
 0x399   : > { %v808_v43 = vmul.f32 1.442695, %v801_v12  ;;  %vm805_vm8 = vcmp.gt.f32.partialorder %v801_v12, 0.0 }
 0x39a   : > { %v806_v8 = vmul.f32 1.442695, %v796_v47  ;;  %vm804_vm9 = vcmp.gt.f32.partialorder %v796_v47, 0.0 }
 0x39b   : > { %2117 = vpow2.f32 %v808_v43 }
 0x39c   : > { %2119 = vpow2.f32 %v806_v8  ;;  %v1089_v8 = vpop.xlane.xlu1 %1088 }
 0x39d   : > { %2121 = vrsqrt.f32 %v1143_v30  ;;  %v2819_v30 = vld [vmem:[%s2977_s3] sm:$0xff] }
 0x3a5   : > { %v2118_v11 = vpop.eup %2117 }
 0x3a6   : > { %v2120_v44 = vpop.eup %2119  ;;  %v1702_v28 = vadd.f32 -1.0, %v2118_v11 }
 0x3a7   : > { %v1701_v38 = vadd.f32 -1.0, %v2120_v44  ;;  %v1129_v44 = vmul.f32 0.015625, %v1089_v8 }
 0x3a8   : > { %v813_v10 = vsel %vm805_vm8, %v801_v12, %v1702_v28  ;;  %v1142_v12 = vadd.f32 1e-05, %v1126_v1 }
 0x3a9   : > { %v812_v46 = vsel %vm804_vm9, %v796_v47, %v1701_v38  ;;  %v1086_v47 = vpop.xlane.xlu0 %1085 }
 0x3aa   : > { %v814_v17 = vadd.f32 %v813_v10, %v812_v46  ;;  %2123 = vrsqrt.f32 %v1142_v12  ;;  %v1128_v11 = vmul.f32 0.015625, %v1086_v47 }
 0x3ac   : > { %v815_v26 = vrot.slane %v814_v17, 4  ;;  %v1144_v38 = vadd.f32 1e-05, %v1128_v11 }
 0x3ae   : > { %v816_v15 = vadd.f32 %v815_v26, %v814_v17  ;;  %v1095_v17 = vpop.xlane.xlu1 %1094 }
 0x3b0   : > { %v817_v51 = vrot.slane %v816_v15, 2 }
 0x3b2   : > { %v818_v52 = vadd.f32 %v817_v51, %v816_v15  ;;  %v2122_v15 = vpop.eup %2121  ;;  %v1131_v51 = vmul.f32 0.015625, %v1095_v17  ;;  %v1101_v32 = vpop.xlane.xlu1 %1100 }
 0x3b4   : > { %v819_v25 = vrot.slane %v818_v52, 1 }
 0x3b6   : > { %v820_v59 = vadd.f32 %v819_v25, %v818_v52  ;;  %v2124_v52 = vpop.eup %2123  ;;  %v1107_v12 = vpop.xlane.xlu1 %1106 }
 0x3b8   : > { %v822_v57 = vmul.f32 0.0625, %v820_v59 }
 0x3ba   : > { %v823_v62 = vsub.f32 %v812_v46, %v822_v57  ;;  %v824_v4 = vsub.f32 %v813_v10, %v822_v57  ;;  %v1145_v10 = vadd.f32 1e-05, %v1129_v44  ;;  %v1092_v46 = vpop.xlane.xlu0 %1091  ;;  %v1147_v57 = vadd.f32 1e-05, %v1131_v51 }
 0x3bb   : > { %v1130_v26 = vmul.f32 0.015625, %v1092_v46 }
 0x3bc   : > { %v825_v9 = vmul.f32 %v823_v62, %v823_v62  ;;  %v826_v13 = vmul.f32 %v824_v4, %v824_v4 }
 0x3bd   : > { %v1146_v25 = vadd.f32 1e-05, %v1130_v26 }
 0x3be   : > { %v827_v18 = vadd.f32 %v826_v13, %v825_v9  ;;  %v1174_v9 = vmul.f32 %v2124_v52, %v2691_v0  ;;  %v1175_v13 = vmul.f32 %v2122_v15, %v2662_v48 }
 0x3c0   : > { %v828_v19 = vrot.slane %v827_v18, 4  ;;  %v1972_v1 = vpack.c.bf16 %v1175_v13, %v1174_v9 }
 0x3c2   : > { %v829_v27 = vadd.f32 %v828_v19, %v827_v18 }
 0x3c4   : > { %v830_v7 = vrot.slane %v829_v27, 2 }
 0x3c6   : > { %v831_v34 = vadd.f32 %v830_v7, %v829_v27  ;;  %v1098_v27 = vpop.xlane.xlu0 %1097  ;;  %v1133_v7 = vmul.f32 0.015625, %v1101_v32 }
 0x3c7   : > { %v1132_v33 = vmul.f32 0.015625, %v1098_v27 }
 0x3c8   : > { %v832_v41 = vrot.slane %v831_v34, 1 }
 0x3c9   : > { %v1148_v48 = vadd.f32 1e-05, %v1132_v33 }
 0x3ca   : > { %v833_v35 = vadd.f32 %v832_v41, %v831_v34  ;;  %v1104_v47 = vpop.xlane.xlu0 %1103 }
 0x3cc   : > { %v834_v43 = vmul.f32 0.0625, %v833_v35  ;;  %v1135_v35 = vmul.f32 0.015625, %v1107_v12 }
 0x3ce   : > { %v835_v28 = vadd.f32 1e-05, %v834_v43  ;;  %v1134_v43 = vmul.f32 0.015625, %v1104_v47  ;;  %v1110_v46 = vpop.xlane.xlu0 %1109 }
 0x3cf   : > { %v1136_v17 = vmul.f32 0.015625, %v1110_v46 }
 0x3d0   : > { %2125 = vrsqrt.f32 %v835_v28  ;;  %v1151_v28 = vadd.f32 1e-05, %v1135_v35 }
 0x3d1   : > { %2127 = vrsqrt.f32 %v1144_v38  ;;  %v1113_v38 = vpop.xlane.xlu1 %1112 }
 0x3d2   : > { %2129 = vrsqrt.f32 %v1145_v10  ;;  %v1137_v10 = vmul.f32 0.015625, %v1113_v38  ;;  %v1116_v9 = vpop.xlane.xlu0 %1115 }
 0x3d3   : > { %2131 = vrsqrt.f32 %v1146_v25  ;;  %v1152_v25 = vadd.f32 1e-05, %v1136_v17  ;;  %v1138_v13 = vmul.f32 0.015625, %v1116_v9 }
 0x3d4   : > { %2133 = vrsqrt.f32 %v1147_v57  ;;  %v1153_v52 = vadd.f32 1e-05, %v1137_v10 }
 0x3d5   : > { %2135 = vrsqrt.f32 %v1148_v48  ;;  %v1154_v33 = vadd.f32 1e-05, %v1138_v13 }
 0x3da   : > { %v2126_v59 = vpop.eup %2125 }
 0x3db   : > { %v837_v18 = vmul.f32 %v2126_v59, %v823_v62  ;;  %v838_v19 = vmul.f32 %v2126_v59, %v824_v4  ;;  %v2128_v34 = vpop.eup %2127  ;;  %v1149_v62 = vadd.f32 1e-05, %v1133_v7  ;;  %v1119_v59 = vpop.xlane.xlu1 %1118 }
 0x3dc   : > { %v2130_v0 = vpop.eup %2129  ;;  %v1176_v4 = vmul.f32 %v2128_v34, %v2696_v14  ;;  %v1150_v14 = vadd.f32 1e-05, %v1134_v43  ;;  %v1139_v57 = vmul.f32 0.015625, %v1119_v59 }
 0x3dd   : > { %v1970_v31 = vpack.c.bf16 %v838_v19, %v837_v18  ;;  %v1177_v41 = vmul.f32 %v2130_v0, %v2702_v63  ;;  %2137 = vrsqrt.f32 %v1149_v62  ;;  %v2132_v8 = vpop.eup %2131 }
 0x3de   : > { %v2134_v44 = vpop.eup %2133  ;;  %v1178_v63 = vmul.f32 %v2132_v8, %v2711_v20  ;;  %2139 = vrsqrt.f32 %v1151_v28  ;;  %v1155_v32 = vadd.f32 1e-05, %v1139_v57 }
 0x3df   : > { %1971 = vmatpush3.bf16.msra.mxu1 %v1970_v31  ;;  %v1978_v11 = vpack.c.bf16 %v1177_v41, %v1176_v4  ;;  %2141 = vrsqrt.f32 %v1150_v14  ;;  %v2136_v26 = vpop.eup %2135  ;;  %v1125_v31 = vpop.xlane.xlu1 %1124 }
 0x3e0   : > { %1974 = vmatprep.subr.msk.bf16.mxu1 %vm2588_vm1, %v1972_v1  ;;  %v1180_v20 = vmul.f32 %v2136_v26, %v2706_v3  ;;  %2143 = vrsqrt.f32 %v1153_v52  ;;  %v1141_v7 = vmul.f32 0.015625, %v1125_v31 }
 0x3e1   : > { %2145 = vrsqrt.f32 %v1152_v25 }
 0x3e2   : > { %1855 = vmatmul.mubr.msk.f32.vlgmr.msra.gmra.mrb[2].mxu1 %vm844_vm10, %v2819_v30  ;;  %2147 = vrsqrt.f32 %v1155_v32  ;;  %v1157_v4 = vadd.f32 1e-05, %v1141_v7 }
 0x3e3   : > { %1889 = vmatprep.mubr.msk.f32.mxu1 %vm282_vm0, %v2531_v5  ;;  %v1179_v5 = vmul.f32 %v2134_v44, %v2719_v61  ;;  %2149 = vrsqrt.f32 %v1154_v33 }
 0x3e4   : > { %2151 = vrsqrt.f32 %v1157_v4 }
 0x3e5   : > { %v1984_v15 = vpack.c.bf16 %v1179_v5, %v1178_v63 }
 0x3e7   : > { %v2138_v51 = vpop.eup %2137 }
 0x3e8   : > { %1977 = vmatpush3.bf16.xpose.msk.msra.mxu1 %vm2588_vm1, %v1972_v1  ;;  %v1181_v61 = vmul.f32 %v2138_v51, %v2726_v24  ;;  %v2140_v18 = vpop.eup %2139  ;;  %v1122_v1 = vpop.xlane.xlu0 %1121 }
 0x3e9   : > { %1980 = vmatprep.subr.msk.bf16.mxu1 %vm2588_vm1, %v1978_v11  ;;  %v2142_v27 = vpop.eup %2141  ;;  %v1183_v24 = vmul.f32 %v2140_v18, %v2735_v50  ;;  %v1140_v34 = vmul.f32 0.015625, %v1122_v1 }
 0x3ea   : > { %v1990_v19 = vpack.c.bf16 %v1181_v61, %v1180_v20  ;;  %v1182_v3 = vmul.f32 %v2142_v27, %v2746_v22  ;;  %v2144_v0 = vpop.eup %2143  ;;  %v2881_v27 = vpop.permute.xlu1 %945 }
 0x3eb   : > { %v2146_v62 = vpop.eup %2145  ;;  %v1156_v41 = vadd.f32 1e-05, %v1140_v34  ;;  %v1185_v50 = vmul.f32 %v2144_v0, %v2756_v16 }
 0x3ec   : > { %v1996_v48 = vpack.c.bf16 %v1183_v24, %v1182_v3  ;;  %v1184_v22 = vmul.f32 %v2146_v62, %v2743_v60  ;;  %v2148_v12 = vpop.eup %2147 }
 0x3ed   : > { %2153 = vrsqrt.f32 %v1156_v41  ;;  %v2150_v47 = vpop.eup %2149  ;;  %v1187_v8 = vmul.f32 %v2148_v12, %v2768_v39 }
 0x3ee   : > { %v2002_v35 = vpack.c.bf16 %v1185_v50, %v1184_v22  ;;  %v1186_v43 = vmul.f32 %v2150_v47, %v2753_v2  ;;  %v2878_v2 = vpop.permute.xlu0 %841  ;;  %v961_v50 = vlaneseq }
 0x3f0   : > { %1983 = vmatpush3.bf16.xpose.msk.msra.mxu1 %vm2588_vm1, %v1978_v11  ;;  %v2152_v11 = vpop.eup %2151  ;;  %v2008_v60 = vpack.c.bf16 %v1187_v8, %v1186_v43  ;;  %vm2892_vm12 = vcmp.lt.s32.totalorder %v961_v50, 128 }
 0x3f1   : > { %1986 = vmatprep.subr.msk.bf16.mxu1 %vm2588_vm1, %v1984_v15  ;;  %v1189_v28 = vmul.f32 %v2152_v11, %v2777_v42 }
 0x3f7   : > { %v2154_v44 = vpop.eup %2153 }
 0x3f8   : > { %1989 = vmatpush3.bf16.xpose.msk.msra.mxu1 %vm2588_vm1, %v1984_v15  ;;  %v1188_v16 = vmul.f32 %v2154_v44, %v2763_v45 }
 0x3f9   : > { %1992 = vmatprep.subr.msk.bf16.mxu1 %vm2588_vm1, %v1990_v19 }
 0x3fa   : > { %v2014_v14 = vpack.c.bf16 %v1189_v28, %v1188_v16 }
 0x400   : > { %1995 = vmatpush3.bf16.xpose.msk.msra.mxu1 %vm2588_vm1, %v1990_v19 }
 0x401   : > { %1998 = vmatprep.subr.msk.bf16.mxu1 %vm2588_vm1, %v1996_v48 }
 0x408   : > { %2001 = vmatpush3.bf16.xpose.msk.msra.mxu1 %vm2588_vm1, %v1996_v48 }
 0x409   : > { %2004 = vmatprep.subr.msk.bf16.mxu1 %vm2588_vm1, %v2002_v35 }
 0x410   : > { %2007 = vmatpush3.bf16.xpose.msk.msra.mxu1 %vm2588_vm1, %v2002_v35 }
 0x411   : > { %2010 = vmatprep.subr.msk.bf16.mxu1 %vm2588_vm1, %v2008_v60 }
 0x418   : > { %2013 = vmatpush3.bf16.xpose.msk.msra.mxu1 %vm2588_vm1, %v2008_v60 }
 0x419   : > { %2016 = vmatprep.subr.msk.bf16.mxu1 %vm2588_vm1, %v2014_v14 }
 0x420   : > { %2019 = vmatpush3.bf16.xpose.msk.msra.mxu1 %vm2588_vm1, %v2014_v14 }
 0x427   : > { %1890 = vmatmul.mubr.msk.f32.vlgmr.msra.gmra.mrb[4].mxu1 %vm282_vm0, %v2667_v54 }
 0x428   : > { %1892 = vmatprep.mubr.msk.f32.mxu1 %vm282_vm0, %v2672_v56 }
 0x42b   : > { %1893 = vmatmul.mubr.msk.f32.gmra.mrb[6].mxu1 %vm282_vm0, %v2686_v58 }
 0x4b5   : > { %v914_v45 = vpop.f32.mrb[2].mxu1 }
 0x4b6   : > { %v915_v39 = vadd.f32 %v914_v45, %v2878_v2  ;;  %v1856_v42 = vpop.f32.mrb[3].mxu1 }
 0x4b8   : > { %v919_v63 = vmul.f32 1.442695, %v915_v39  ;;  %vm918_vm11 = vcmp.gt.f32.partialorder %v915_v39, 0.0 }
 0x4ba   : > { %2155 = vpow2.f32 %v919_v63 }
 0x4c4   : > { %v2156_v23 = vpop.eup %2155 }
 0x4c5   : > { %v1704_v5 = vadd.f32 -1.0, %v2156_v23 }
 0x4c7   : > { %v922_v38 = vsel %vm918_vm11, %v915_v39, %v1704_v5 }
 0x4c8   : > { %v923_v54 = vrot.slane %v922_v38, 4 }
 0x4ca   : > { %v924_v10 = vadd.f32 %v923_v54, %v922_v38 }
 0x4cc   : > { %v925_v46 = vrot.slane %v924_v10, 2 }
 0x4ce   : > { %v926_v56 = vadd.f32 %v925_v46, %v924_v10 }
 0x4d0   : > { %v927_v17 = vrot.slane %v926_v56, 1 }
 0x4d2   : > { %v928_v26 = vadd.f32 %v927_v17, %v926_v56 }
 0x4d4   : > { %v930_v58 = vmul.f32 0.125, %v928_v26 }
 0x4d6   : > { %v931_v15 = vsub.f32 %v922_v38, %v930_v58 }
 0x4d8   : > { %v932_v51 = vmul.f32 %v931_v15, %v931_v15 }
 0x4da   : > { %v933_v52 = vrot.slane %v932_v51, 4 }
 0x4dc   : > { %v934_v25 = vadd.f32 %v933_v52, %v932_v51 }
 0x4de   : > { %v935_v20 = vrot.slane %v934_v25, 2 }
 0x4e0   : > { %v936_v61 = vadd.f32 %v935_v20, %v934_v25 }
 0x4e2   : > { %v937_v59 = vrot.slane %v936_v61, 1 }
 0x4e4   : > { %v938_v57 = vadd.f32 %v937_v59, %v936_v61 }
 0x4e6   : > { %v939_v9 = vmul.f32 0.125, %v938_v57 }
 0x4e8   : > { %v940_v13 = vadd.f32 1e-05, %v939_v9 }
 0x4ea   : > { %2157 = vrsqrt.f32 %v940_v13 }
 0x4f4   : > { %v2158_v18 = vpop.eup %2157 }
 0x4f5   : > { %v942_v19 = vmul.f32 %v2158_v18, %v931_v15 }
 0x4f7   : > { %v948_v32 = vmul.f32 %v2881_v27, %v942_v19 }
 0x4f9   : > { %v949_v33 = vrot.slane %v948_v32, 4 }
 0x4fa   : > { %v1891_v3 = vpop.f32.mrb[4].mxu1 }
 0x4fb   : > { %v950_v24 = vadd.f32 %v949_v33, %v948_v32  ;;  %v1310_v31 = vadd.f32 %v1891_v3, %v2653_v36  ;;  %v1304_v7 = vpop.f32.mrb[5].mxu1 }
 0x4fc   : > { %v1305_v1 = vadd.f32 %v1304_v7, %v2655_v21  ;;  %v2890_v21 = vpop.permute.xlu1 %957 }
 0x4fd   : > { %v951_v34 = vrot.slane %v950_v24, 2  ;;  %v1329_v0 = vmul.f32 1.442695, %v1310_v31  ;;  %vm1324_vm13 = vcmp.gt.f32.partialorder %v1310_v31, 0.0 }
 0x4fe   : > { %v1327_v48 = vmul.f32 1.442695, %v1305_v1  ;;  %v1894_v62 = vpop.f32.mrb[6].mxu1  ;;  %vm1323_vm14 = vcmp.gt.f32.partialorder %v1305_v1, 0.0 }
 0x4ff   : > { %v952_v4 = vadd.f32 %v951_v34, %v950_v24  ;;  %2159 = vpow2.f32 %v1329_v0  ;;  %v1320_v41 = vadd.f32 %v1894_v62, %v2676_v55  ;;  %v1314_v22 = vpop.f32.mrb[7].mxu1 }
 0x500   : > { %2161 = vpow2.f32 %v1327_v48  ;;  %v1315_v12 = vadd.f32 %v1314_v22, %v2659_v29 }
 0x501   : > { %v953_v35 = vrot.slane %v952_v4, 1  ;;  %v1333_v36 = vmul.f32 1.442695, %v1320_v41  ;;  %vm1326_vm0 = vcmp.gt.f32.partialorder %v1320_v41, 0.0 }
 0x502   : > { %v1331_v47 = vmul.f32 1.442695, %v1315_v12  ;;  %vm1325_vm15 = vcmp.gt.f32.partialorder %v1315_v12, 0.0 }
 0x503   : > { %v954_v43 = vadd.f32 %v953_v35, %v952_v4  ;;  %2163 = vpow2.f32 %v1333_v36 }
 0x504   : > { %2165 = vpow2.f32 %v1331_v47 }
 0x505   : > { %v960_v55 = vadd.f32 %v2890_v21, %v954_v43 }
 0x507   : > { %965 = vst.msk [vmem:[%s2897_s15] sm:$0x1] %vm2892_vm12, %v960_v55 }
 0x509   : > { %v2160_v29 = vpop.eup %2159 }
 0x50a   : > { %v2162_v11 = vpop.eup %2161  ;;  %v1726_v60 = vadd.f32 -1.0, %v2160_v29 }
 0x50b   : > { %v1725_v44 = vadd.f32 -1.0, %v2162_v11 }
 0x50c   : > { %v1340_v16 = vsel %vm1324_vm13, %v1310_v31, %v1726_v60 }
 0x50d   : > { %v2164_v28 = vpop.eup %2163  ;;  %v1339_v14 = vsel %vm1323_vm14, %v1305_v1, %v1725_v44 }
 0x50e   : > { %v2166_v45 = vpop.eup %2165  ;;  %v1343_v39 = vadd.f32 %v1340_v16, %v1339_v14  ;;  %v1728_v42 = vadd.f32 -1.0, %v2164_v28 }
 0x50f   : > { %v1727_v63 = vadd.f32 -1.0, %v2166_v45 }
 0x510   : > { %v1342_v38 = vsel %vm1326_vm0, %v1320_v41, %v1728_v42 }
 0x511   : > { %v1341_v23 = vsel %vm1325_vm15, %v1315_v12, %v1727_v63 }
 0x512   : > { %v1344_v5 = vadd.f32 %v1343_v39, %v1341_v23 }
 0x514   : > { %v1345_v54 = vadd.f32 %v1344_v5, %v1342_v38 }
 0x516   : > { %v1346_v10 = vrot.slane %v1345_v54, 4 }
 0x518   : > { %v1347_v46 = vadd.f32 %v1346_v10, %v1345_v54 }
 0x51a   : > { %v1348_v56 = vrot.slane %v1347_v46, 2 }
 0x51c   : > { %v1349_v17 = vadd.f32 %v1348_v56, %v1347_v46 }
 0x51e   : > { %v1350_v26 = vrot.slane %v1349_v17, 1 }
 0x520   : > { %v1351_v58 = vadd.f32 %v1350_v26, %v1349_v17 }
 0x522   : > { %v1352_v15 = vmul.f32 0.03125, %v1351_v58 }
 0x524   : > { %v1355_v51 = vsub.f32 %v1341_v23, %v1352_v15  ;;  %v1353_v52 = vsub.f32 %v1339_v14, %v1352_v15  ;;  %v1354_v25 = vsub.f32 %v1340_v16, %v1352_v15  ;;  %v1356_v20 = vsub.f32 %v1342_v38, %v1352_v15 }
 0x526   : > { %v1357_v61 = vmul.f32 %v1353_v52, %v1353_v52  ;;  %v1358_v59 = vmul.f32 %v1354_v25, %v1354_v25  ;;  %v1359_v57 = vmul.f32 %v1355_v51, %v1355_v51  ;;  %v1360_v13 = vmul.f32 %v1356_v20, %v1356_v20 }
 0x528   : > { %v1361_v9 = vadd.f32 %v1358_v59, %v1357_v61 }
 0x52a   : > { %v1362_v18 = vadd.f32 %v1361_v9, %v1359_v57 }
 0x52c   : > { %v1363_v19 = vadd.f32 %v1362_v18, %v1360_v13 }
 0x52e   : > { %v1364_v32 = vrot.slane %v1363_v19, 4 }
 0x530   : > { %v1365_v33 = vadd.f32 %v1364_v32, %v1363_v19 }
 0x532   : > { %v1366_v3 = vrot.slane %v1365_v33, 2 }
 0x534   : > { %v1367_v24 = vadd.f32 %v1366_v3, %v1365_v33 }
 0x536   : > { %v1368_v31 = vrot.slane %v1367_v24, 1 }
 0x538   : > { %v1369_v7 = vadd.f32 %v1368_v31, %v1367_v24 }
 0x53a   : > { %v1370_v1 = vmul.f32 0.03125, %v1369_v7 }
 0x53c   : > { %v1371_v34 = vadd.f32 1e-05, %v1370_v1 }
 0x53e   : > { %2167 = vrsqrt.f32 %v1371_v34 }
 0x548   : > { %v2168_v0 = vpop.eup %2167 }
 0x549   : > { %v1373_v48 = vmul.f32 %v2168_v0, %v1353_v52  ;;  %v1374_v62 = vmul.f32 %v2168_v0, %v1354_v25  ;;  %v1375_v4 = vmul.f32 %v2168_v0, %v1355_v51  ;;  %v1376_v41 = vmul.f32 %v2168_v0, %v1356_v20 }
 0x54b   : > { %v2020_v22 = vpack.c.bf16 %v1374_v62, %v1373_v48  ;;  %v2024_v50 = vpack.c.bf16 %v1376_v41, %v1375_v4 }
 0x54d   : > { %2021 = vmatprep.subr.bf16.mxu0 %v2020_v22 }
 0x54e   : > { %2023 = vmatpush3.bf16.msra.mxu0 %v2020_v22 }
 0x54f   : > { %2025 = vmatprep.subr.bf16.mxu0 %v2024_v50 }
 0x552   : > { %2027 = vmatpush3.bf16.msra.mxu0 %v2024_v50 }
 0x553   : > { %2028 = vmatprep.subr.bf16.mxu0 %v2244_v40 }
 0x555   : > { %1904 = vmatmul.mubr.msk.f32.vlgmr.msra.gmra.mrb[4].mxu0 %vm722_vm2, %v2805_v37 }
 0x556   : > { %1910 = vmatprep.mubr.msk.f32.mxu0 %vm2245_vm7, %v2246_v6 }
 0x628   : > { %v1905_v12 = vpop.f32.mrb[4].mxu0 }
 0x629   : > { %v1449_v35 = vadd.f32 %v1905_v12, %v2740_v53  ;;  %v1443_v36 = vpop.f32.mrb[5].mxu0 }
 0x62a   : > { %v1444_v47 = vadd.f32 %v1443_v36, %v2732_v49 }
 0x62b   : > { %v1456_v43 = vmul.f32 1.442695, %v1449_v35  ;;  %vm1453_vm1 = vcmp.gt.f32.partialorder %v1449_v35, 0.0 }
 0x62c   : > { %v1454_v55 = vmul.f32 1.442695, %v1444_v47  ;;  %vm1452_vm2 = vcmp.gt.f32.partialorder %v1444_v47, 0.0 }
 0x62d   : > { %2169 = vpow2.f32 %v1456_v43 }
 0x62e   : > { %2171 = vpow2.f32 %v1454_v55 }
 0x637   : > { %v2170_v29 = vpop.eup %2169 }
 0x638   : > { %v2172_v11 = vpop.eup %2171  ;;  %v1732_v60 = vadd.f32 -1.0, %v2170_v29 }
 0x639   : > { %v1731_v40 = vadd.f32 -1.0, %v2172_v11 }
 0x63a   : > { %v1461_v44 = vsel %vm1453_vm1, %v1449_v35, %v1732_v60 }
 0x63b   : > { %v1460_v37 = vsel %vm1452_vm2, %v1444_v47, %v1731_v40 }
 0x63c   : > { %v1462_v16 = vadd.f32 %v1461_v44, %v1460_v37 }
 0x63e   : > { %v1463_v6 = vrot.slane %v1462_v16, 4 }
 0x640   : > { %v1464_v28 = vadd.f32 %v1463_v6, %v1462_v16 }
 0x642   : > { %v1465_v14 = vrot.slane %v1464_v28, 2 }
 0x644   : > { %v1466_v53 = vadd.f32 %v1465_v14, %v1464_v28 }
 0x646   : > { %v1467_v45 = vrot.slane %v1466_v53, 1 }
 0x648   : > { %v1468_v39 = vadd.f32 %v1467_v45, %v1466_v53 }
 0x64a   : > { %v1469_v49 = vmul.f32 0.0625, %v1468_v39 }
 0x64c   : > { %v1470_v42 = vsub.f32 %v1460_v37, %v1469_v49  ;;  %v1471_v63 = vsub.f32 %v1461_v44, %v1469_v49 }
 0x64e   : > { %v1472_v23 = vmul.f32 %v1470_v42, %v1470_v42  ;;  %v1473_v5 = vmul.f32 %v1471_v63, %v1471_v63 }
 0x650   : > { %v1474_v38 = vadd.f32 %v1473_v5, %v1472_v23 }
 0x652   : > { %v1475_v54 = vrot.slane %v1474_v38, 4 }
 0x654   : > { %v1476_v10 = vadd.f32 %v1475_v54, %v1474_v38 }
 0x656   : > { %v1477_v46 = vrot.slane %v1476_v10, 2 }
 0x658   : > { %v1478_v56 = vadd.f32 %v1477_v46, %v1476_v10 }
 0x65a   : > { %v1479_v17 = vrot.slane %v1478_v56, 1 }
 0x65c   : > { %v1480_v26 = vadd.f32 %v1479_v17, %v1478_v56 }
 0x65e   : > { %v1481_v58 = vmul.f32 0.0625, %v1480_v26 }
 0x660   : > { %v1482_v15 = vadd.f32 1e-05, %v1481_v58 }
 0x662   : > { %2173 = vrsqrt.f32 %v1482_v15 }
 0x66c   : > { %v2174_v51 = vpop.eup %2173 }
 0x66d   : > { %v1484_v52 = vmul.f32 %v2174_v51, %v1470_v42  ;;  %v1485_v25 = vmul.f32 %v2174_v51, %v1471_v63 }
 0x66f   : > { %v2029_v20 = vpack.c.bf16 %v1485_v25, %v1484_v52 }
 0x671   : > { %2030 = vmatpush3.bf16.msra.mxu0 %v2029_v20 }
 0x674   : > { %1911 = vmatmul.mubr.msk.f32.vlgmr.msra.gmra.mrb[6].mxu0 %vm844_vm10, %v2819_v30 }
 0x747   : > { %v1552_v61 = vpop.f32.mrb[6].mxu0 }
 0x748   : > { %v1553_v59 = vadd.f32 %v1552_v61, %v2878_v2  ;;  %v1912_v57 = vpop.f32.mrb[7].mxu0 }
 0x74a   : > { %v1557_v9 = vmul.f32 1.442695, %v1553_v59  ;;  %vm1556_vm3 = vcmp.gt.f32.partialorder %v1553_v59, 0.0 }
 0x74c   : > { %2175 = vpow2.f32 %v1557_v9 }
 0x756   : > { %v2176_v13 = vpop.eup %2175 }
 0x757   : > { %v1734_v18 = vadd.f32 -1.0, %v2176_v13 }
 0x759   : > { %v1560_v19 = vsel %vm1556_vm3, %v1553_v59, %v1734_v18 }
 0x75a   : > { %v1561_v32 = vrot.slane %v1560_v19, 4 }
 0x75c   : > { %v1562_v33 = vadd.f32 %v1561_v32, %v1560_v19 }
 0x75e   : > { %v1563_v3 = vrot.slane %v1562_v33, 2 }
 0x760   : > { %v1564_v24 = vadd.f32 %v1563_v3, %v1562_v33 }
 0x762   : > { %v1565_v31 = vrot.slane %v1564_v24, 1 }
 0x764   : > { %v1566_v7 = vadd.f32 %v1565_v31, %v1564_v24 }
 0x766   : > { %v1567_v1 = vmul.f32 0.125, %v1566_v7 }
 0x768   : > { %v1568_v34 = vsub.f32 %v1560_v19, %v1567_v1 }
 0x76a   : > { %v1569_v0 = vmul.f32 %v1568_v34, %v1568_v34 }
 0x76c   : > { %v1570_v30 = vrot.slane %v1569_v0, 4 }
 0x76e   : > { %v1571_v48 = vadd.f32 %v1570_v30, %v1569_v0 }
 0x770   : > { %v1572_v62 = vrot.slane %v1571_v48, 2 }
 0x772   : > { %v1573_v2 = vadd.f32 %v1572_v62, %v1571_v48 }
 0x774   : > { %v1574_v4 = vrot.slane %v1573_v2, 1 }
 0x776   : > { %v1575_v41 = vadd.f32 %v1574_v4, %v1573_v2 }
 0x778   : > { %v1576_v22 = vmul.f32 0.125, %v1575_v41 }
 0x77a   : > { %v1577_v50 = vadd.f32 1e-05, %v1576_v22 }
 0x77c   : > { %2177 = vrsqrt.f32 %v1577_v50 }
 0x786   : > { %v2178_v12 = vpop.eup %2177 }
 0x787   : > { %v1579_v35 = vmul.f32 %v2178_v12, %v1568_v34 }
 0x789   : > { %v1580_v36 = vmul.f32 %v1579_v35, %v2881_v27 }
 0x78b   : > { %v1581_v47 = vrot.slane %v1580_v36, 4 }
 0x78d   : > { %v1582_v43 = vadd.f32 %v1581_v47, %v1580_v36 }
 0x78f   : > { %v1583_v55 = vrot.slane %v1582_v43, 2 }
 0x791   : > { %v1584_v29 = vadd.f32 %v1583_v55, %v1582_v43 }
 0x793   : > { %v1585_v11 = vrot.slane %v1584_v29, 1  ;;  %1596 = sbr.rel (!%p2316_p5) target bundleno = 1973 (0x7b5), region = 44 }
 0x795   : > { %v1586_v60 = vadd.f32 %v1585_v11, %v1584_v29 }
 0x797   : > { %v1587_v40 = vadd.f32 %v1586_v60, %v2890_v21 }
 0x799   : > { %1588 = vst.msk [vmem:[%s2897_s15 + $0x1] sm:$0x1] %vm2892_vm12, %v1587_v40 }
 0x79a   : > { %s2991_s23 = smov (!%p1599_p11, %s1598_s23), 2 }
 0x79b   : > { %s2924_s25 = sshll.u32 %s2991_s23, 4 }
 0x79c   : > { %s1603_s26 = ssub.s32 32, %s2924_s25 }
 0x79d   : > { %1604 = vsyncadd %s2919_s16, %s1603_s26  ;;  %p1738_p12 = scmp.ne.s32.totalorder %s2924_s25, 0  ;;  %s2933_s7 = scalar_lea.hbm %s2979_s5, %s2327_s30 }
 0x79e   : > { %s1609_s22 = sshll.u32 %s2897_s15, 4  ;;  %s2247_s9 = smov [#allocation2]   ;;  %s1610_s22 = int_to_ptr.vmem [resolvable:$true] %s1609_s22 }
 0x79f   : > { %s2179_s8 = scalar_lea.vmem %s1610_s22, %s2924_s25  ;;  %s2183_s10 = sshll.u32 %s2247_s9, 4  ;;  %s2184_s10 = int_to_ptr.vmem [resolvable:$false] %s2183_s10 }
 0x7a0   : > { %p2180_p13 = scmp.ne.s32.totalorder %s1610_s22, %s2179_s8  ;;  %s2185_s11 = scalar_lea.vmem %s2184_s10, 64 }
 0x7a1   : > { %p2186_p2 = scmp.lt.s32.totalorder %s1610_s22, %s2184_s10  ;;  %p2187_p3 = scmp.lt.s32.totalorder %s2185_s11, %s2179_s8 }
 0x7a2   : > { %p2181_p0 = pnand %p2180_p13, %p1738_p12 }
 0x7a3   : > { %p2188_p4 = por %p2187_p3, %p2186_p2 }
 0x7a4   : > { %p2182_p1 = pneg %p2181_p0 }
 0x7a6   : > { %p2189_p5 = pnand %p2188_p4, %p2182_p1 }
 0x7a8   : > { %2192 = shalt.err (!%p2189_p5)
}
 0x7a9   : > { %s2193_s30 = scalar_lea.hbm %s2933_s7, %s2924_s25  ;;  %s2197_s14 = scalar_lea.hbm %s2979_s5, 48 }
 0x7aa   : > { %p2194_p7 = scmp.ne.s32.totalorder %s2933_s7, %s2193_s30  ;;  %p2198_p10 = scmp.lt.u32.totalorder %s2933_s7, %s2979_s5 }
 0x7ab   : > { %p2199_p11 = scmp.lt.u32.totalorder %s2197_s14, %s2193_s30  ;;  %p2201_p0 = scmp.lt.u32.totalorder %s2193_s30, %s2933_s7 }
 0x7ac   : > { %p2195_p8 = pnand %p2194_p7, %p1738_p12 }
 0x7ad   : > { %p2200_p13 = por %p2199_p11, %p2198_p10 }
 0x7ae   : > { %p2196_p9 = pneg %p2195_p8 }
 0x7af   : > { %p2202_p1 = por %p2201_p0, %p2200_p13 }
 0x7b1   : > { %p2203_p2 = pnand %p2202_p1, %p2196_p9 }
 0x7b3   : > { %2206 = shalt.err (!%p2203_p2)
}
 0x7b4   : > { %1612 = dma.vmem_to_hbm [thread:$0]  (%p1738_p12), %s1610_s22, %s2924_s25, %s2933_s7, %s2919_s16  }
 0x7b5 PF: > { %p2036_p3 = scmp.ge.s32.totalorder %s2241_s21, 2  ;;  %s1621_s23 = sand.u32 1, %s2229_s18  }
 0x7b6   : > { %s1622_s26 = scalar_lea.sflag [#allocation3], %s1621_s23 }
 0x7b7   : > { %p2033_p4 = pnand %p2036_p3, %p2320_p6 }
 0x7b9   : > { %2224 = dma.done.wait (!%p2033_p4), %s1622_s26, 32  }
 0x7ba   : > { %2226 = vsyncadd (!%p2033_p4), %s1622_s26, 4294967264  ;;  %p15_p5 = scmp.ge.s32.totalorder %s2303_s24, 4   ;;  %s2986_s18 = smov %s2233_s19 }
 0x7bb   : > { %s2987_s19 = smov %s2237_s20  ;;  %s2988_s20 = smov %s2314_s27 }
 0x7bc   : > { %s2989_s21 = smov %s2303_s24  ;;  %17 = sbr.rel (!%p15_p5) target bundleno = 3 (0x3), region = 75 }
 0x7c3   :  { %1627 = vsyncpa [#allocation3], 1 }
 0x7c4   :  { %1629 = vsyncpa [#allocation3 + $0x1], 1 }

</bundles_post_ra>
